<compile_context>
chip_gen: v7x
topology: tpu7x:2x2x1
jax: 0.10.0
libtpu: 0.0.40
codegen_flags: <defaults>
</compile_context>

<pallas_src>
import jax
import jax.numpy as jnp
from jax import lax
from jax.experimental import pallas as pl
from jax.experimental.pallas import tpu as pltpu


def _relu(x):
    return jnp.maximum(x, 0.0)


# ---------------------------------------------------------------------------
# Kernel 1: point loop (conv1 / conv2 / conv3 + running max over points).
# ---------------------------------------------------------------------------
def stn_point_kernel(x_ref, w1_ref, s1_ref, w2_ref, s2_ref, w3_ref, pmax_ref):
    """Running max of the *raw* conv3 output per (batch, split).

    Grid = (B, S, nsteps); the point-tile axis n is the reduction axis and is
    last / 'arbitrary'.  x arrives in native NCW layout as an f32 (k, tn) tile
    (lane dim = tn); the bf16 cast happens in-kernel and the first matmul is a
    transposed-LHS contraction over the channel axis.  The layer-3 bias/ReLU
    are deferred to the head kernel, so the (tn, 1024) tensor only feeds a max.

    pmax_ref is the (1, 1, 8, 1024) output block; its index_map is independent
    of n, so it stays VMEM-resident across the point loop (written every step:
    init at n == 0, running max afterwards) and is flushed to HBM only when the
    (b, s) block index changes.
    """
    n = pl.program_id(2)

    x = x_ref[0].astype(jnp.bfloat16)                                # (k, tn)
    # conv1: contract channel axis of x (dim 0) with dim 0 of w1 -> (tn, 64)
    h1 = _relu(lax.dot_general(x, w1_ref[...], (((0,), (0,)), ((), ())),
                               preferred_element_type=jnp.float32)
               + s1_ref[...])                                        # (tn, 64)
    h2 = _relu(jnp.dot(h1.astype(jnp.bfloat16), w2_ref[...],
                       preferred_element_type=jnp.float32)
               + s2_ref[...])                                        # (tn, 128)
    h3 = jnp.dot(h2.astype(jnp.bfloat16), w3_ref[...],
                 preferred_element_type=jnp.float32)                 # (tn, 1024) raw

    tn = h3.shape[0]
    # Sublane-partial max: reduce over whole vreg rows (VPU only), keep (8,1024).
    part = jnp.max(h3.reshape(tn // 8, 8, 1024), axis=0)             # (8, 1024)
    part = part.reshape(1, 1, 8, 1024)

    @pl.when(n == 0)
    def _():
        pmax_ref[...] = part

    @pl.when(n > 0)
    def _():
        pmax_ref[...] = jnp.maximum(pmax_ref[...], part)


# ---------------------------------------------------------------------------
# Kernel 2: FC head (fc1/bn4, fc2/bn5, fc3 + identity), batched over B.
# ---------------------------------------------------------------------------
def stn_head_kernel(gmax_ref, s3_ref, w4_ref, s4_ref, w5_ref, s5_ref,
                    w6_ref, s6_ref, out_ref):
    # Apply the deferred conv3/bn3 shift + ReLU once on the (B, 1024) global
    # feature, then the FC stack (BN folded; fc3's bias absorbs the identity).
    g = jnp.maximum(gmax_ref[...] + s3_ref[...], 0.0).astype(jnp.bfloat16)
    h4 = _relu(jnp.dot(g, w4_ref[...],
                       preferred_element_type=jnp.float32) + s4_ref[...])   # (B, 512)
    h5 = _relu(jnp.dot(h4.astype(jnp.bfloat16), w5_ref[...],
                       preferred_element_type=jnp.float32) + s5_ref[...])   # (B, 256)
    out_ref[...] = (jnp.dot(h5.astype(jnp.bfloat16), w6_ref[...],
                            preferred_element_type=jnp.float32)
                    + s6_ref[...])                                          # (B, k*k)


# ---------------------------------------------------------------------------
# Parameters (PyTorch-like form) and eval-mode BN folding.
# ---------------------------------------------------------------------------
def init_params(key, k=64):
    """Deterministic synthetic parameters: weight (Cin, Cout), bias (Cout,),
    and BN gamma/beta/mean/var for layers 1-5."""
    dims = [(k, 64), (64, 128), (128, 1024), (1024, 512), (512, 256), (256, k * k)]
    keys = jax.random.split(key, 6 * len(dims))
    ki = iter(range(len(keys)))

    def nrm(shape, scale):
        return scale * jax.random.normal(keys[next(ki)], shape, dtype=jnp.float32)

    params = {}
    for idx, (cin, cout) in enumerate(dims, start=1):
        params[f"w{idx}"] = nrm((cin, cout), float(1.0 / (cin ** 0.5)))
        params[f"b{idx}"] = nrm((cout,), 0.05)
        if idx <= 5:  # followed by BatchNorm
            params[f"gamma{idx}"] = 1.0 + nrm((cout,), 0.1)
            params[f"beta{idx}"] = nrm((cout,), 0.1)
            params[f"mean{idx}"] = nrm((cout,), 0.1)
            params[f"var{idx}"] = 1.0 + jnp.abs(nrm((cout,), 0.1))
    return params


def fold_params(params, k=64, eps=1e-5):
    """Fold eval-mode BN into the preceding conv/fc:
         y = scale*(x@w + b - mean) + beta = x@(w*scale) + (beta + scale*(b - mean))
    Folded weights are cast to bf16 (MXU-native); shifts stay f32.
    fc3's bias additionally absorbs the flattened identity matrix."""
    folded = {}
    for idx in range(1, 6):
        w, b = params[f"w{idx}"], params[f"b{idx}"]
        scale = params[f"gamma{idx}"] / jnp.sqrt(params[f"var{idx}"] + eps)
        shift = params[f"beta{idx}"] + scale * (b - params[f"mean{idx}"])
        folded[f"w{idx}"] = (w * scale[None, :]).astype(jnp.bfloat16)
        folded[f"s{idx}"] = shift.reshape(1, -1).astype(jnp.float32)
    iden = jnp.eye(k, dtype=jnp.float32).reshape(1, k * k)
    folded["w6"] = params["w6"].astype(jnp.bfloat16)
    folded["s6"] = (params["b6"].reshape(1, k * k) + iden).astype(jnp.float32)
    return folded


# ---------------------------------------------------------------------------
# Forward wrapper.
# ---------------------------------------------------------------------------
def stnkd_forward(x_ncw, folded, k=64, tn=2048, num_splits=None):
    """x_ncw: (B, k, N) float32 (PyTorch NCW).  Returns (B, k, k) float32."""
    B, k_in, N = x_ncw.shape
    assert k_in == k

    if num_splits is None:
        # With a single batch the batch-parallel axis leaves the second v7x
        # TensorCore idle; split the point axis instead when cleanly divisible.
        num_splits = 2 if (B == 1 and N % 256 == 0) else 1
    S = num_splits
    assert N % S == 0, "num_splits must divide N"
    n_split = N // S
    tn = min(tn, n_split)
    assert n_split % tn == 0, "tn must divide the per-split point count"
    assert tn % 8 == 0 and (tn % 128 == 0 or tn == N), \
        "point tile must be lane-aligned (multiple of 128) or cover all of N"
    nsteps = n_split // tn

    def wspec(shape):
        return pl.BlockSpec(shape, lambda b, s, n: (0, 0))

    flops = 2 * B * N * (k * 64 + 64 * 128 + 128 * 1024)
    bytes_accessed = (int(x_ncw.size) * 4
                      + sum(int(folded[f"w{i}"].size) * 2 for i in (1, 2, 3))
                      + B * S * 8 * 1024 * 4)

    # --- point loop: raw conv3 running max, (B, S, 8, 1024) partials ---------
    pmax = pl.pallas_call(
        stn_point_kernel,
        out_shape=jax.ShapeDtypeStruct((B, S, 8, 1024), jnp.float32),
        grid=(B, S, nsteps),
        in_specs=[
            pl.BlockSpec((1, k, tn), lambda b, s, n: (b, 0, s * nsteps + n)),
            wspec((k, 64)),     wspec((1, 64)),
            wspec((64, 128)),   wspec((1, 128)),
            wspec((128, 1024)),
        ],
        out_specs=pl.BlockSpec((1, 1, 8, 1024), lambda b, s, n: (b, s, 0, 0)),
        compiler_params=pltpu.CompilerParams(
            dimension_semantics=("parallel", "parallel", "arbitrary"),
            vmem_limit_bytes=48 * 1024 * 1024),
        cost_estimate=pl.CostEstimate(flops=flops, transcendentals=0,
                                      bytes_accessed=bytes_accessed),
    )(x_ncw,
      folded["w1"], folded["s1"],
      folded["w2"], folded["s2"],
      folded["w3"])

    # Final reduce over splits + sublanes (tiny: B*S*8*1024 f32) in plain XLA.
    gmax = jnp.max(pmax, axis=(1, 2))                                # (B, 1024)

    # --- FC head: tiny pallas_call batched over B ----------------------------
    out = pl.pallas_call(
        stn_head_kernel,
        out_shape=jax.ShapeDtypeStruct((B, k * k), jnp.float32),
        grid=(1,),
        in_specs=[
            pl.BlockSpec((B, 1024), lambda i: (0, 0)),
            pl.BlockSpec((1, 1024), lambda i: (0, 0)),
            pl.BlockSpec((1024, 512), lambda i: (0, 0)),
            pl.BlockSpec((1, 512), lambda i: (0, 0)),
            pl.BlockSpec((512, 256), lambda i: (0, 0)),
            pl.BlockSpec((1, 256), lambda i: (0, 0)),
            pl.BlockSpec((256, k * k), lambda i: (0, 0)),
            pl.BlockSpec((1, k * k), lambda i: (0, 0)),
        ],
        out_specs=pl.BlockSpec((B, k * k), lambda i: (0, 0)),
        compiler_params=pltpu.CompilerParams(
            dimension_semantics=("arbitrary",),
            vmem_limit_bytes=32 * 1024 * 1024),
    )(gmax, folded["s3"],
      folded["w4"], folded["s4"],
      folded["w5"], folded["s5"],
      folded["w6"], folded["s6"])

    return out.reshape(B, k, k)


# ---------------------------------------------------------------------------
# Pure-JAX reference mirroring the kernel's bf16-operand / f32-accum math.
# ---------------------------------------------------------------------------
def stnkd_reference(x_ncw, folded, k=64):
    def q(a):  # match the kernel's bf16 quantization of activations
        return a.astype(jnp.bfloat16).astype(jnp.float32)

    def mm(a, w_bf16, shift, relu=True):
        y = jnp.dot(q(a), w_bf16.astype(jnp.float32)) + shift
        return jnp.maximum(y, 0.0) if relu else y

    x0 = jnp.transpose(x_ncw, (0, 2, 1))                             # (B, N, k)
    h1 = mm(x0, folded["w1"], folded["s1"])
    h2 = mm(h1, folded["w2"], folded["s2"])
    raw = jnp.max(jnp.dot(q(h2), folded["w3"].astype(jnp.float32)), axis=1)  # (B,1024)
    g = jnp.maximum(raw + folded["s3"], 0.0)                         # deferred bn3+relu
    h4 = mm(g, folded["w4"], folded["s4"])
    h5 = mm(h4, folded["w5"], folded["s5"])
    out = mm(h5, folded["w6"], folded["s6"], relu=False)
    return out.reshape(-1, k, k)


if __name__ == "__main__":
    key = jax.random.PRNGKey(0)
    pkey, xkey = jax.random.split(key)

    k = 64          # STNkd default: conv1 takes k channels, output is (B, k, k)
    B, N = 2, 256   # small batch / number of points

    params = init_params(pkey, k=k)
    folded = fold_params(params, k=k)
    x = jax.random.normal(xkey, (B, k, N), dtype=jnp.float32)        # PyTorch NCW

    out = jax.block_until_ready(stnkd_forward(x, folded, k=k))
    assert out.shape == (B, k, k) and out.dtype == jnp.float32
    ref = jax.block_until_ready(stnkd_reference(x, folded, k=k))
    max_err = float(jnp.max(jnp.abs(out - ref)))
    assert max_err < 2e-2, f"mismatch vs reference: {max_err}"

    # Also exercise the split-N path (fills the second v7x TensorCore at B==1).
    x1 = jax.random.normal(jax.random.PRNGKey(1), (1, k, 512), dtype=jnp.float32)
    out1 = jax.block_until_ready(stnkd_forward(x1, folded, k=k, num_splits=2))
    ref1 = jax.block_until_ready(stnkd_reference(x1, folded, k=k))
    max_err1 = float(jnp.max(jnp.abs(out1 - ref1)))
    assert max_err1 < 2e-2, f"split-path mismatch vs reference: {max_err1}"

    print("KERNEL_OK")
</pallas_src>

<mosaic_0001>
module attributes {stable_mosaic.version = 11 : i64} {
  func.func @stn_point_kernel(%arg0: i32, %arg1: i32, %arg2: i32, %arg3: memref<1x64x256xf32, #tpu.memory_space<vmem>>, %arg4: memref<64x64xbf16, #tpu.memory_space<vmem>>, %arg5: memref<1x64xf32, #tpu.memory_space<vmem>>, %arg6: memref<64x128xbf16, #tpu.memory_space<vmem>>, %arg7: memref<1x128xf32, #tpu.memory_space<vmem>>, %arg8: memref<128x1024xbf16, #tpu.memory_space<vmem>>, %arg9: memref<1x1x8x1024xf32, #tpu.memory_space<vmem>>) attributes {dimension_semantics = [#tpu.dimension_semantics<parallel>, #tpu.dimension_semantics<parallel>, #tpu.dimension_semantics<arbitrary>], iteration_bounds = array<i64: 2, 1, 1>, scalar_prefetch = 0 : i64, scratch_operands = 0 : i64, tpu.core_type = #tpu.core_type<tc>, window_params = [{transform_indices = @transform_0, window_bounds = array<i64: 1, 64, 256>}, {pipeline_mode = #tpu.pipeline_mode<synchronous>, transform_indices = @transform_1, window_bounds = array<i64: 64, 64>}, {pipeline_mode = #tpu.pipeline_mode<synchronous>, transform_indices = @transform_2, window_bounds = array<i64: 1, 64>}, {pipeline_mode = #tpu.pipeline_mode<synchronous>, transform_indices = @transform_3, window_bounds = array<i64: 64, 128>}, {pipeline_mode = #tpu.pipeline_mode<synchronous>, transform_indices = @transform_4, window_bounds = array<i64: 1, 128>}, {pipeline_mode = #tpu.pipeline_mode<synchronous>, transform_indices = @transform_5, window_bounds = array<i64: 128, 1024>}, {transform_indices = @transform_6, window_bounds = array<i64: 1, 1, 8, 1024>}]} {
    %c0 = arith.constant 0 : index
    %c0_0 = arith.constant 0 : index
    %c0_1 = arith.constant 0 : index
    %0 = vector.load %arg3[%c0, %c0_0, %c0_1] : memref<1x64x256xf32, #tpu.memory_space<vmem>>, vector<1x64x256xf32>
    %1 = vector.shape_cast %0 : vector<1x64x256xf32> to vector<64x256xf32>
    %2 = arith.truncf %1 : vector<64x256xf32> to vector<64x256xbf16>
    %c0_2 = arith.constant 0 : index
    %c0_3 = arith.constant 0 : index
    %3 = vector.load %arg4[%c0_2, %c0_3] : memref<64x64xbf16, #tpu.memory_space<vmem>>, vector<64x64xbf16>
    %cst = arith.constant dense<0.000000e+00> : vector<256x64xf32>
    %4 = tpu.matmul %2, %3, %cst {dimension_numbers = #tpu.dot_dimension_numbers<[0], [0], [1], [1], [0, 1, 1, 1], [], []>} : vector<64x256xbf16>, vector<64x64xbf16>, vector<256x64xf32> -> vector<256x64xf32>
    %c0_4 = arith.constant 0 : index
    %c0_5 = arith.constant 0 : index
    %5 = vector.load %arg5[%c0_4, %c0_5] : memref<1x64xf32, #tpu.memory_space<vmem>>, vector<1x64xf32>
    %6 = vector.broadcast %5 : vector<1x64xf32> to vector<256x64xf32>
    %7 = arith.addf %4, %6 : vector<256x64xf32>
    %cst_6 = arith.constant 0.000000e+00 : f32
    %8 = vector.broadcast %cst_6 : f32 to vector<256x64xf32>
    %9 = arith.maximumf %7, %8 : vector<256x64xf32>
    %10 = arith.truncf %9 : vector<256x64xf32> to vector<256x64xbf16>
    %c0_7 = arith.constant 0 : index
    %c0_8 = arith.constant 0 : index
    %11 = vector.load %arg6[%c0_7, %c0_8] : memref<64x128xbf16, #tpu.memory_space<vmem>>, vector<64x128xbf16>
    %cst_9 = arith.constant dense<0.000000e+00> : vector<256x128xf32>
    %12 = tpu.matmul %10, %11, %cst_9 {dimension_numbers = #tpu.dot_dimension_numbers<[1], [0], [0], [1], [0, 0, 1, 1], [], []>} : vector<256x64xbf16>, vector<64x128xbf16>, vector<256x128xf32> -> vector<256x128xf32>
    %c0_10 = arith.constant 0 : index
    %c0_11 = arith.constant 0 : index
    %13 = vector.load %arg7[%c0_10, %c0_11] : memref<1x128xf32, #tpu.memory_space<vmem>>, vector<1x128xf32>
    %14 = vector.broadcast %13 : vector<1x128xf32> to vector<256x128xf32>
    %15 = arith.addf %12, %14 : vector<256x128xf32>
    %cst_12 = arith.constant 0.000000e+00 : f32
    %16 = vector.broadcast %cst_12 : f32 to vector<256x128xf32>
    %17 = arith.maximumf %15, %16 : vector<256x128xf32>
    %18 = arith.truncf %17 : vector<256x128xf32> to vector<256x128xbf16>
    %c0_13 = arith.constant 0 : index
    %c0_14 = arith.constant 0 : index
    %19 = vector.load %arg8[%c0_13, %c0_14] : memref<128x1024xbf16, #tpu.memory_space<vmem>>, vector<128x1024xbf16>
    %cst_15 = arith.constant dense<0.000000e+00> : vector<256x1024xf32>
    %20 = tpu.matmul %18, %19, %cst_15 {dimension_numbers = #tpu.dot_dimension_numbers<[1], [0], [0], [1], [0, 0, 1, 1], [], []>} : vector<256x128xbf16>, vector<128x1024xbf16>, vector<256x1024xf32> -> vector<256x1024xf32>
    %21 = vector.shape_cast %20 : vector<256x1024xf32> to vector<32x8x1024xf32>
    %cst_16 = arith.constant dense<0xFF800000> : vector<8x1024xf32>
    %22 = vector.multi_reduction <maximumf>, %21, %cst_16 [0] : vector<32x8x1024xf32> to vector<8x1024xf32>
    %23 = vector.shape_cast %22 : vector<8x1024xf32> to vector<1x1x8x1024xf32>
    %c0_i32 = arith.constant 0 : i32
    %24 = arith.cmpi eq, %arg2, %c0_i32 : i32
    %25 = arith.extui %24 : i1 to i32
    %c0_i32_17 = arith.constant 0 : i32
    %26 = arith.cmpi ne, %25, %c0_i32_17 : i32
    scf.if %26 {
      %c0_20 = arith.constant 0 : index
      %c0_21 = arith.constant 0 : index
      %c0_22 = arith.constant 0 : index
      %c0_23 = arith.constant 0 : index
      %30 = vector.load %arg9[%c0_20, %c0_21, %c0_22, %c0_23] : memref<1x1x8x1024xf32, #tpu.memory_space<vmem>>, vector<1x1x8x1024xf32>
      tpu.vector_store %arg9[%c0_20, %c0_21, %c0_22, %c0_23], %23 {strides = array<i32>} : memref<1x1x8x1024xf32, #tpu.memory_space<vmem>>, vector<1x1x8x1024xf32>,
    } else {
    }
    %c0_i32_18 = arith.constant 0 : i32
    %27 = arith.cmpi sgt, %arg2, %c0_i32_18 : i32
    %28 = arith.extui %27 : i1 to i32
    %c0_i32_19 = arith.constant 0 : i32
    %29 = arith.cmpi ne, %28, %c0_i32_19 : i32
    scf.if %29 {
      %c0_20 = arith.constant 0 : index
      %c0_21 = arith.constant 0 : index
      %c0_22 = arith.constant 0 : index
      %c0_23 = arith.constant 0 : index
      %30 = vector.load %arg9[%c0_20, %c0_21, %c0_22, %c0_23] : memref<1x1x8x1024xf32, #tpu.memory_space<vmem>>, vector<1x1x8x1024xf32>
      %31 = arith.maximumf %30, %23 : vector<1x1x8x1024xf32>
      %c0_24 = arith.constant 0 : index
      %c0_25 = arith.constant 0 : index
      %c0_26 = arith.constant 0 : index
      %c0_27 = arith.constant 0 : index
      %32 = vector.load %arg9[%c0_24, %c0_25, %c0_26, %c0_27] : memref<1x1x8x1024xf32, #tpu.memory_space<vmem>>, vector<1x1x8x1024xf32>
      tpu.vector_store %arg9[%c0_24, %c0_25, %c0_26, %c0_27], %31 {strides = array<i32>} : memref<1x1x8x1024xf32, #tpu.memory_space<vmem>>, vector<1x1x8x1024xf32>,
    } else {
    }
    return
  }
  func.func @transform_0(%arg0: i32, %arg1: i32, %arg2: i32) -> (i32, i32, i32) {
    %c1_i32 = arith.constant 1 : i32
    %0 = arith.muli %arg1, %c1_i32 : i32
    %1 = arith.addi %0, %arg2 : i32
    %c0_i32 = arith.constant 0 : i32
    %c0_i32_0 = arith.constant 0 : i32
    return %arg0, %c0_i32, %1 : i32, i32, i32
  }
  func.func @transform_1(%arg0: i32, %arg1: i32, %arg2: i32) -> (i32, i32) {
    %c0_i32 = arith.constant 0 : i32
    %c0_i32_0 = arith.constant 0 : i32
    %c0_i32_1 = arith.constant 0 : i32
    return %c0_i32, %c0_i32_0 : i32, i32
  }
  func.func @transform_2(%arg0: i32, %arg1: i32, %arg2: i32) -> (i32, i32) {
    %c0_i32 = arith.constant 0 : i32
    %c0_i32_0 = arith.constant 0 : i32
    %c0_i32_1 = arith.constant 0 : i32
    return %c0_i32, %c0_i32_0 : i32, i32
  }
  func.func @transform_3(%arg0: i32, %arg1: i32, %arg2: i32) -> (i32, i32) {
    %c0_i32 = arith.constant 0 : i32
    %c0_i32_0 = arith.constant 0 : i32
    %c0_i32_1 = arith.constant 0 : i32
    return %c0_i32, %c0_i32_0 : i32, i32
  }
  func.func @transform_4(%arg0: i32, %arg1: i32, %arg2: i32) -> (i32, i32) {
    %c0_i32 = arith.constant 0 : i32
    %c0_i32_0 = arith.constant 0 : i32
    %c0_i32_1 = arith.constant 0 : i32
    return %c0_i32, %c0_i32_0 : i32, i32
  }
  func.func @transform_5(%arg0: i32, %arg1: i32, %arg2: i32) -> (i32, i32) {
    %c0_i32 = arith.constant 0 : i32
    %c0_i32_0 = arith.constant 0 : i32
    %c0_i32_1 = arith.constant 0 : i32
    return %c0_i32, %c0_i32_0 : i32, i32
  }
  func.func @transform_6(%arg0: i32, %arg1: i32, %arg2: i32) -> (i32, i32, i32, i32) {
    %c0_i32 = arith.constant 0 : i32
    %c0_i32_0 = arith.constant 0 : i32
    %c0_i32_1 = arith.constant 0 : i32
    return %arg0, %arg1, %c0_i32, %c0_i32_0 : i32, i32, i32, i32
  }
}

</mosaic_0001>

<bundles_post_ra>
// kernel: tpu_custom_call.1
= control target key start
LH: loop header
LB: loop body
LE: loop exit
PB: predicated region body
PF: predicated region fallthrough
CT: control target
= control target key end

     0   :  { %s3767_s0 = inlined_call_operand.hbm [shape: f32[2,64,256], index: 0, kind: input, shape index: {}]   ;;  %s3768_s1 = inlined_call_operand.hbm [shape: bf16[64,64], index: 1, kind: input, shape index: {}]   ;;  %s3769_s2 = inlined_call_operand.vmem [shape: f32[1,64], index: 2, kind: input, shape index: {}]   ;;  %s3770_s3 = inlined_call_operand.hbm [shape: bf16[64,128], index: 3, kind: input, shape index: {}]   ;;  %s3771_s4 = inlined_call_operand.vmem [shape: f32[1,128], index: 4, kind: input, shape index: {}]   ;;  %s3772_s5 = inlined_call_operand.hbm [shape: bf16[128,1024], index: 5, kind: input, shape index: {}]   ;;  %s3773_s6 = inlined_call_operand.hbm [shape: f32[2,1,8,1024], index: 6, kind: output, shape index: {}]  }
   0x1   :  { %3781 = sst [smem:[#allocation17_spill]] %s3773_s6 }
   0x2   :  { %11 = vsyncpa [#allocation3], 0 }
   0x3   :  { %13 = vsyncpa [#allocation3 + $0x1], 0 }
   0x4   :  { %14 = vsyncpa [#allocation6], 0 }
   0x5   :  { %15 = vsyncpa [#allocation9], 0 }
   0x6   :  { %16 = vsyncpa [#allocation4], 0 }
   0x7   :  { %18 = vsyncpa [#allocation4 + $0x1], 0  ;;  %s3182_s21 = smov 0   ;;  %s3184_s22 = smov 0  }
   0x8   :  { %s3186_s23 = smov 0   ;;  %s3188_s24 = smov 0  }
   0x9   :  { %s3190_s25 = smov 0   ;;  %s3192_s26 = smov 0  }
   0xa LB: > { %3782 = sst [smem:[#allocation15_spill]] %s3113_s21  ;;  %s2572_s27 = sadd.s32 4294967295, %s3133_s26   ;;  %s3133_s26 = sphi %s3192_s26, %s24_s26   ;;  %s3129_s25 = sphi %s3190_s25, %s3807_s25   ;;  %s3125_s24 = sphi %s3188_s24, %s3806_s24   ;;  %s3121_s23 = sphi %s3186_s23, %s3805_s23   ;;  %s3117_s22 = sphi %s3184_s22, %s3804_s22   ;;  %s3113_s21 = sphi %s3182_s21, %s3803_s21  }
   0xb   : > { %s2573_s28 = sadd.s32 4294967294, %s3133_s26   ;;  %p67_p0 = scmp.ne.s32.totalorder %s3117_s22, %s3113_s21 }
   0xc   : > { %p3216_p1 = scmp.eq.s32.totalorder %s2572_s27, 0  ;;  %p3220_p2 = scmp.eq.s32.totalorder %s2572_s27, 1 }
   0xd   : > { %p204_p3 = scmp.eq.s32.totalorder %s2573_s28, 1  ;;  %p2574_p5 = scmp.ge.s32.totalorder %s3133_s26, 1 }
   0xe   : > { %s3783_s29 = scalar_select %p3216_p1, 1, 0 }
   0xf   : > { %s3784_s30 = scalar_select %p3220_p2, 1, 0 }
  0x10   : > { %p3226_p4 = por %p3216_p1, %p67_p0  ;;  %p3231_p6 = por %p204_p3, %p67_p0 }
  0x11   : > { %p211_p7 = scmp.lt.s32.totalorder %s3133_s26, 3  ;;  %s3135_s10 = smov [#allocation5]  }
  0x12   : > { %s3785_s7 = scalar_select %p3226_p4, 1, 0 }
  0x13   : > { %s3786_s8 = scalar_select %p3231_p6, 1, 0 }
  0x14   : > { %p3236_p8 = pnand %p2574_p5, %p211_p7  ;;  %s223_s11 = sshll.u32 %s3135_s10, 4  ;;  %s3240_s11 = int_to_ptr.vmem [resolvable:$true] %s223_s11 }
  0x15   : > { %3787 = sst [smem:[#allocation16_spill]] %s3786_s8  ;;  %s3136_s13 = smov [#allocation7]  }
  0x16   : > { %s3788_s9 = scalar_select %p3236_p8, 1, 0 }
  0x17   : > { %p2837_p9 = pneg %p3236_p8  ;;  %s239_s14 = sshll.u32 %s3136_s13, 4  ;;  %s3251_s14 = int_to_ptr.vmem [resolvable:$true] %s239_s14 }
  0x18   : > { %s3137_s15 = smov [#allocation8]   ;;  %s2929_s19 = scalar_lea.hbm %s3768_s1, 512 }
  0x19   : > { %p3247_p11 = pnand %p2837_p9, %p3216_p1  ;;  %s3253_s16 = sshll.u32 %s3137_s15, 4  ;;  %s256_s16 = int_to_ptr.vmem [resolvable:$true] %s3253_s16 }
  0x1a   : > { %p2930_p12 = scmp.ne.s32.totalorder %s3768_s1, %s2929_s19  ;;  %p2936_p5 = scmp.lt.u32.totalorder %s2929_s19, %s3768_s1 }
  0x1b   : > { %p3263_p13 = pneg %p3247_p11 }
  0x1d   : > { %p2932_p0 = pnand %p3263_p13, %p2930_p12 }
  0x1f   : > { %p2933_p3 = pneg %p2932_p0 }
  0x21   : > { %p2938_p7 = pnand %p2936_p5, %p2933_p3 }
  0x23   : > { %2941 = shalt.err (!%p2938_p7)
}
  0x24   : > { %s2942_s15 = scalar_lea.vmem %s3240_s11, 512  ;;  %p2950_p1 = scmp.lt.s32.totalorder %s3240_s11, %s3240_s11 }
  0x25   : > { %p2943_p9 = scmp.ne.s32.totalorder %s3240_s11, %s2942_s15  ;;  %p2951_p4 = scmp.lt.s32.totalorder %s2942_s15, %s2942_s15 }
  0x27   : > { %p2945_p10 = pnand %p2943_p9, %p3263_p13  ;;  %p2952_p12 = por %p2951_p4, %p2950_p1 }
  0x29   : > { %p2946_p6 = pneg %p2945_p10 }
  0x2b   : > { %p2953_p0 = pnand %p2952_p12, %p2946_p6 }
  0x2d   : > { %2956 = shalt.err (!%p2953_p0)
}
  0x2e   : > { %s3138_s17 = smov 64   ;;  %s3139_s18 = smov 4  }
  0x2f   : > { %2840 = dma.hbm_to_vmem [thread:$0]  (!%p3247_p11), %s3768_s1, 512, %s3240_s11, [#allocation6], %s3138_s17, %s3138_s17, %s3139_s18  }
  0x30   : > { %s2957_s13 = scalar_lea.hbm %s3770_s3, 512 }
  0x31   : > { %p2958_p1 = scmp.ne.s32.totalorder %s3770_s3, %s2957_s13  ;;  %p2964_p10 = scmp.lt.u32.totalorder %s2957_s13, %s3770_s3 }
  0x33   : > { %p2960_p4 = pnand %p2958_p1, %p3263_p13 }
  0x35   : > { %p2961_p6 = pneg %p2960_p4 }
  0x37   : > { %p2966_p3 = pnand %p2964_p10, %p2961_p6 }
  0x39   : > { %2969 = shalt.err (!%p2966_p3)
}
  0x3a   : > { %s2970_s11 = scalar_lea.vmem %s3251_s14, 512  ;;  %p2978_p12 = scmp.lt.s32.totalorder %s3251_s14, %s3251_s14 }
  0x3b   : > { %p2971_p5 = scmp.ne.s32.totalorder %s3251_s14, %s2970_s11  ;;  %p2979_p0 = scmp.lt.s32.totalorder %s2970_s11, %s2970_s11 }
  0x3d   : > { %p2973_p7 = pnand %p2971_p5, %p3263_p13  ;;  %p2980_p1 = por %p2979_p0, %p2978_p12 }
  0x3f   : > { %p2974_p9 = pneg %p2973_p7 }
  0x41   : > { %p2981_p4 = pnand %p2980_p1, %p2974_p9 }
  0x43   : > { %2984 = shalt.err (!%p2981_p4)
}
  0x44   : > { %2843 = dma.hbm_to_vmem [thread:$0]  (!%p3247_p11), %s3770_s3, 512, %s3251_s14, [#allocation6], %s3138_s17, %s3138_s17, %s3139_s18  }
  0x45   : > { %s2985_s20 = scalar_lea.hbm %s3772_s5, 8192 }
  0x46   : > { %p2986_p6 = scmp.ne.s32.totalorder %s3772_s5, %s2985_s20  ;;  %p2992_p5 = scmp.lt.u32.totalorder %s2985_s20, %s3772_s5 }
  0x48   : > { %p2988_p10 = pnand %p2986_p6, %p3263_p13 }
  0x4a   : > { %p2989_p3 = pneg %p2988_p10 }
  0x4c   : > { %p2994_p7 = pnand %p2992_p5, %p2989_p3 }
  0x4e   : > { %2997 = shalt.err (!%p2994_p7)
}
  0x4f   : > { %s2998_s11 = scalar_lea.vmem %s256_s16, 8192  ;;  %p3006_p1 = scmp.lt.s32.totalorder %s256_s16, %s256_s16 }
  0x50   : > { %p2999_p9 = scmp.ne.s32.totalorder %s256_s16, %s2998_s11  ;;  %p3007_p4 = scmp.lt.s32.totalorder %s2998_s11, %s2998_s11 }
  0x52   : > { %p3001_p12 = pnand %p2999_p9, %p3263_p13  ;;  %p3008_p8 = por %p3007_p4, %p3006_p1 }
  0x54   : > { %p3002_p0 = pneg %p3001_p12 }
  0x56   : > { %p3009_p2 = pnand %p3008_p8, %p3002_p0 }
  0x58   : > { %3012 = shalt.err (!%p3009_p2)
}
  0x59   : > { %s3140_s14 = smov 512   ;;  %s3141_s28 = smov 32  }
  0x5a   : > { %2846 = dma.hbm_to_vmem [thread:$0]  (!%p3247_p11), %s3772_s5, 8192, %s256_s16, [#allocation9], %s3140_s14, %s3140_s14, %s3141_s28  }
  0x5b   : > { %s54_s6 = sadd.s32 1, %s3121_s23  ;;  %s43_s21 = sadd.s32 1, %s3129_s25 }
  0x5c   : > { %p61_p2 = scmp.ne.s32.totalorder %s3121_s23, %s3117_s22  ;;  %p45_p8 = scmp.ge.s32.totalorder %s43_s21, 2 }
  0x5d   : > { %p62_p13 = scmp.eq.s32.totalorder %s3133_s26, 0  ;;  %p3791_p6 = scmp.ne.s32.totalorder %s3784_s30, 0 }
  0x5e   : > { %p2858_p3 = scmp.lt.s32.totalorder %s3133_s26, 2  ;;  %s3809_s21 = smov (%p45_p8, %s43_s21), 0 }
  0x5f   : > { %p3333_p10 = por %p3791_p6, %p61_p2  ;;  %p63_p5 = por %p62_p13, %p61_p2 }
  0x60   : > { %s269_s12 = sand.u32 1, %s3121_s23   ;;  %s49_s19 = ssub.s32 %s3129_s25, %s3809_s21 }
  0x61   : > { %p52_p7 = scmp.eq.s32.totalorder %s49_s19, 0  ;;  %s2579_s16 = sshll.u32 %s269_s12, 7 }
  0x62   : > { %s2699_s20 = sshll.u32 %s3129_s25, 11  ;;  %s273_s15 = scalar_lea.vmem [#allocation2], %s2579_s16 }
  0x63   : > { %s3345_s27 = scalar_select %p52_p7, %s3121_s23, %s54_s6  }
  0x64   : > { %s3350_s30 = scalar_lea.hbm %s3767_s0, %s2699_s20  ;;  %s283_s11 = sshll.u32 %s273_s15, 4  ;;  %s3352_s11 = int_to_ptr.vmem [resolvable:$true] %s283_s11 }
  0x65   : > { %p3356_p11 = pnand %p2858_p3, %p63_p5  ;;  %s3360_s28 = scalar_lea.sflag [#allocation3], %s269_s12 }
  0x66   : > { %s3013_s17 = scalar_lea.hbm %s3350_s30, 2048  ;;  %s3018_s19 = scalar_lea.hbm %s3767_s0, 4096 }
  0x67   : > { %p3014_p9 = scmp.ne.s32.totalorder %s3350_s30, %s3013_s17  ;;  %p3015_p12 = pneg %p3356_p11 }
  0x68   : > { %p3019_p4 = scmp.lt.u32.totalorder %s3350_s30, %s3767_s0  ;;  %p3020_p2 = scmp.lt.u32.totalorder %s3018_s19, %s3013_s17 }
  0x69   : > { %p3016_p0 = pnand %p3015_p12, %p3014_p9  ;;  %p3022_p13 = scmp.lt.u32.totalorder %s3013_s17, %s3350_s30 }
  0x6a   : > { %p3021_p8 = por %p3020_p2, %p3019_p4 }
  0x6b   : > { %p3017_p1 = pneg %p3016_p0 }
  0x6c   : > { %p3023_p6 = por %p3022_p13, %p3021_p8 }
  0x6e   : > { %p3024_p3 = pnand %p3023_p6, %p3017_p1 }
  0x70   : > { %3027 = shalt.err (!%p3024_p3)
}
  0x71   : > { %s3028_s12 = scalar_lea.vmem %s3352_s11, 2048  ;;  %s3142_s10 = smov [#allocation2]  }
  0x72   : > { %p3029_p5 = scmp.ne.s32.totalorder %s3352_s11, %s3028_s12  ;;  %s3033_s13 = sshll.u32 %s3142_s10, 4  ;;  %s3034_s13 = int_to_ptr.vmem [resolvable:$false] %s3033_s13 }
  0x73   : > { %s3035_s15 = scalar_lea.vmem %s3034_s13, 4096  ;;  %p3036_p0 = scmp.lt.s32.totalorder %s3352_s11, %s3034_s13 }
  0x74   : > { %p3031_p7 = pnand %p3029_p5, %p3015_p12  ;;  %p3037_p4 = scmp.lt.s32.totalorder %s3035_s15, %s3028_s12 }
  0x76   : > { %p3032_p9 = pneg %p3031_p7  ;;  %p3038_p2 = por %p3037_p4, %p3036_p0 }
  0x78   : > { %p3039_p8 = pnand %p3038_p2, %p3032_p9 }
  0x7a   : > { %3042 = shalt.err (!%p3039_p8)
}
  0x7b   : > { %s3143_s17 = smov 256   ;;  %s3144_s18 = smov 16  }
  0x7c   : > { %2850 = dma.hbm_to_vmem [thread:$0]  (!%p3356_p11), %s3350_s30, 2048, %s3352_s11, %s3360_s28, %s3143_s17, %s3143_s17, %s3144_s18  }
  0x7d   : > { %p3794_p12 = scmp.ne.s32.totalorder %s3788_s9, 0 }
  0x7e   : > { %s3391_s6 = sand.u32 (!%p3794_p12), 1, %s3117_s22   ;;  %p3795_p1 = scmp.ne.s32.totalorder (!%p3794_p12), %s3785_s7, 0 }
  0x7f   : > { %295 = sbr.rel (%p3794_p12) target bundleno = 1172 (0x494), region = 44  ;;  %s2583_s19 = sshll.u32 (!%p3794_p12), %s3391_s6, 7 }
  0x80   : > { %s298_s16 = scalar_lea.sflag (!%p3794_p12), [#allocation3], %s3391_s6  ;;  %s3395_s20 = scalar_lea.vmem (!%p3794_p12), [#allocation2], %s2583_s19 }
  0x86   : > { %3096 = dma.done.wait (%p3795_p1), %s298_s16, 2048  }
  0x87   : > { %3098 = vsyncadd (%p3795_p1), %s298_s16, 4294965248  ;;  %p3796_p11 = scmp.ne.s32.totalorder %s3783_s29, 0 }
  0x89   : > { %3100 = dma.done.wait (%p3796_p11), [#allocation6], 1024  }
  0x8a   : > { %3102 = vsyncadd (%p3796_p11), [#allocation6], 4294966272 }
  0x8b   : > { %3104 = dma.done.wait (%p3796_p11), [#allocation9], 8192  }
  0x8c   : > { %3106 = vsyncadd (%p3796_p11), [#allocation9], 4294959104  ;;  %v345_v0 = vld [vmem:[%s3395_s20] sm:$0xff]  ;;  %v347_v1 = vld [vmem:[%s3395_s20 + $0x10] sm:$0xff]  ;;  %vm440_vm0 = vcmask 523264   ;;  %s2587_s11 = sshll.u32 %s3391_s6, 6 }
  0x8d   : > { %v349_v2 = vld [vmem:[%s3395_s20 + $0x20] sm:$0xff]  ;;  %v361_v3 = vpack.c.bf16 %v347_v1, %v345_v0  ;;  %v351_v4 = vld [vmem:[%s3395_s20 + $0x30] sm:$0xff]  ;;  %v346_v5 = vld [vmem:[%s3395_s20 + $0x8] sm:$0xff]  ;;  %s3703_s14 = scalar_lea.vmem [#allocation10], %s2587_s11  ;;  %s2700_s28 = sshll.u32 %s3125_s24, 10 }
  0x8e   : > { %v363_v6 = vpack.c.bf16 %v351_v4, %v349_v2  ;;  %v348_v7 = vld [vmem:[%s3395_s20 + $0x18] sm:$0xff]  ;;  %v350_v8 = vld [vmem:[%s3395_s20 + $0x28] sm:$0xff]  ;;  %v353_v10 = vld [vmem:[%s3395_s20 + $0x40] sm:$0xff]  ;;  %s2455_s12 = sshll.u32 %s3703_s14, 4  ;;  %s3797_s15 = sld [smem:[#allocation17_spill]]  ;;  %s3716_s12 = int_to_ptr.vmem [resolvable:$true] %s2455_s12 }
  0x8f   : > { %384 = vxpose.xlu0.c.b16.start [1/4] (short) %v361_v3, 128  ;;  %v352_v9 = vld [vmem:[%s3395_s20 + $0x38] sm:$0xff]  ;;  %v355_v11 = vld [vmem:[%s3395_s20 + $0x50] sm:$0xff]  ;;  %v362_v12 = vpack.c.bf16 %v348_v7, %v346_v5  ;;  %v354_v13 = vld [vmem:[%s3395_s20 + $0x48] sm:$0xff]  ;;  %s2439_s24 = scalar_lea.sflag [#allocation4], %s3391_s6  ;;  %s3043_s18 = scalar_lea.vmem %s3716_s12, 1024 }
  0x90   : > { %v356_v14 = vld [vmem:[%s3395_s20 + $0x58] sm:$0xff]  ;;  %v357_v15 = vld [vmem:[%s3395_s20 + $0x60] sm:$0xff]  ;;  %v364_v16 = vpack.c.bf16 %v352_v9, %v350_v8  ;;  %v365_v18 = vpack.c.bf16 %v355_v11, %v353_v10  ;;  %v2922_v19 = vld [vmem:[#allocation5 + $0x8] sm:$0xff]   ;;  %p3044_p13 = scmp.ne.s32.totalorder %s3716_s12, %s3043_s18  ;;  %s3146_s19 = smov [#allocation10]  }
  0x91   : > { %400 = vxpose.xlu1.c.b16.start [1/4] (short) %v362_v12, 128  ;;  %v2921_v17 = vld [vmem:[#allocation5] sm:$0xff]   ;;  %v359_v20 = vld [vmem:[%s3395_s20 + $0x70] sm:$0xff]  ;;  %v358_v21 = vld [vmem:[%s3395_s20 + $0x68] sm:$0xff]  ;;  %v366_v24 = vpack.c.bf16 %v356_v14, %v354_v13  ;;  %s3047_s16 = sshll.u32 %s3146_s19, 4  ;;  %s3048_s16 = int_to_ptr.vmem [resolvable:$false] %s3047_s16 }
  0x92   : > { %2741 = vmatprep.subr.bf16.mxu0 %v2921_v17  ;;  %v360_v22 = vld [vmem:[%s3395_s20 + $0x78] sm:$0xff]  ;;  %v2923_v23 = vld [vmem:[#allocation5 + $0x10] sm:$0xff]   ;;  %v367_v25 = vpack.c.bf16 %v359_v20, %v357_v15  ;;  %v2925_v28 = vld [vmem:[#allocation7] sm:$0xff]   ;;  %p3045_p6 = pnand %p3044_p13, %p3333_p10  ;;  %s3049_s20 = scalar_lea.vmem %s3048_s16, 2048 }
  0x93   : > { %385 = vxpose.xlu0.c.b16.cont [2/4] (short) %v363_v6, 128  ;;  %2742 = vmatpush3.bf16.msra.mxu0 %v2921_v17  ;;  %v368_v26 = vpack.c.bf16 %v360_v22, %v358_v21  ;;  %v2924_v27 = vld [vmem:[#allocation5 + $0x18] sm:$0xff]   ;;  %v2926_v29 = vld [vmem:[#allocation7 + $0x8] sm:$0xff]   ;;  %v2927_v46 = vld [vmem:[#allocation7 + $0x10] sm:$0xff]   ;;  %p3050_p5 = scmp.lt.s32.totalorder %s3716_s12, %s3048_s16  ;;  %p3051_p7 = scmp.lt.s32.totalorder %s3049_s20, %s3043_s18 }
  0x94   : > { %2743 = vmatprep.subr.bf16.mxu0 %v2922_v19  ;;  %2781 = vmatprep.subr.bf16.mxu1 %v2925_v28  ;;  %v2928_v47 = vld [vmem:[#allocation7 + $0x18] sm:$0xff]   ;;  %v994_v48 = vld [vmem:[#allocation8] sm:$0xff]  ;;  %v3441_v50 = vld [vmem:[#allocation8 + $0x8] sm:$0xff]  ;;  %s3714_s17 = scalar_lea.hbm %s3797_s15, %s2700_s28  ;;  %p3046_p3 = pneg %p3045_p6 }
  0x95   : > { %401 = vxpose.xlu1.c.b16.cont [2/4] (short) %v364_v16, 128  ;;  %2782 = vmatpush3.bf16.msra.mxu1 %v2925_v28  ;;  %v998_v49 = vld [vmem:[#allocation8 + $0x20] sm:$0xff]  ;;  %v3443_v53 = vld [vmem:[#allocation8 + $0x28] sm:$0xff]  ;;  %p3052_p9 = por %p3051_p7, %p3050_p5 }
  0x96   : > { %2783 = vmatprep.subr.bf16.mxu1 %v2926_v29  ;;  %v2630_v51 = vcombine.low %v994_v48, %v998_v49  ;;  %v2631_v52 = vcombine.high %v994_v48, %v998_v49  ;;  %v1002_v54 = vld [vmem:[#allocation8 + $0x40] sm:$0xff]  ;;  %v2632_v56 = vcombine.low %v3441_v50, %v3443_v53  ;;  %v2633_v57 = vcombine.high %v3441_v50, %v3443_v53 }
  0x97   : > { %386 = vxpose.xlu0.c.b16.cont [3/4] (short) %v365_v18, 128  ;;  %2744 = vmatpush3.bf16.msra.mxu0 %v2922_v19  ;;  %v1006_v55 = vld [vmem:[#allocation8 + $0x60] sm:$0xff]  ;;  %p3053_p0 = pnand %p3052_p9, %p3046_p3 }
  0x98   : > { %2745 = vmatprep.subr.bf16.mxu0 %v2923_v23  ;;  %v2639_v58 = vcombine.high %v1002_v54, %v1006_v55  ;;  %v1010_v59 = vld [vmem:[#allocation8 + $0x80] sm:$0xff]  ;;  %v2638_v61 = vcombine.low %v1002_v54, %v1006_v55 }
  0x99   : > { %402 = vxpose.xlu1.c.b16.cont [3/4] (short) %v366_v24, 128  ;;  %2784 = vmatpush3.bf16.msra.mxu1 %v2926_v29  ;;  %v1014_v60 = vld [vmem:[#allocation8 + $0xa0] sm:$0xff]  ;;  %v1003_v29 = vld [vmem:[#allocation8 + $0x48] sm:$0xff] }
  0x9a   : > { %2785 = vmatprep.subr.bf16.mxu1 %v2927_v46  ;;  %v2647_v62 = vcombine.high %v1010_v59, %v1014_v60  ;;  %v1018_v63 = vld [vmem:[#allocation8 + $0xc0] sm:$0xff]  ;;  %v2646_v1 = vcombine.low %v1010_v59, %v1014_v60 }
  0x9b   : > { %387 = vxpose.xlu0.c.b16.end [4/4] (short) %v367_v25, 128  ;;  %2746 = vmatpush3.bf16.msra.mxu0 %v2923_v23  ;;  %v1022_v0 = vld [vmem:[#allocation8 + $0xe0] sm:$0xff] }
  0x9c   : > { %2747 = vmatprep.subr.bf16.mxu0 %v2924_v27  ;;  %v2655_v2 = vcombine.high %v1018_v63, %v1022_v0  ;;  %v1026_v3 = vld [vmem:[#allocation8 + $0x100] sm:$0xff]  ;;  %v2654_v5 = vcombine.low %v1018_v63, %v1022_v0 }
  0x9d   : > { %403 = vxpose.xlu1.c.b16.end [4/4] (short) %v368_v26, 128  ;;  %2786 = vmatpush3.bf16.msra.mxu1 %v2927_v46  ;;  %v1030_v4 = vld [vmem:[#allocation8 + $0x120] sm:$0xff] }
  0x9e   : > { %2787 = vmatprep.subr.bf16.mxu1 %v2928_v47  ;;  %v2663_v6 = vcombine.high %v1026_v3, %v1030_v4  ;;  %v1034_v7 = vld [vmem:[#allocation8 + $0x140] sm:$0xff]  ;;  %v2662_v9 = vcombine.low %v1026_v3, %v1030_v4 }
  0x9f   : > { %2748 = vmatpush3.bf16.msra.mxu0 %v2924_v27  ;;  %v1038_v8 = vld [vmem:[#allocation8 + $0x160] sm:$0xff] }
  0xa0   : > { %1378 = vmatprep.subr.bf16.mxu0 %v2631_v52  ;;  %v2671_v10 = vcombine.high %v1034_v7, %v1038_v8  ;;  %v1042_v11 = vld [vmem:[#allocation8 + $0x180] sm:$0xff]  ;;  %v2670_v13 = vcombine.low %v1034_v7, %v1038_v8  ;;  %v1023_v52 = vld [vmem:[#allocation8 + $0xe8] sm:$0xff] }
  0xa1   : > { %2788 = vmatpush3.bf16.msra.mxu1 %v2928_v47  ;;  %v1046_v12 = vld [vmem:[#allocation8 + $0x1a0] sm:$0xff]  ;;  %v1035_v8 = vld [vmem:[#allocation8 + $0x148] sm:$0xff] }
  0xa2   : > { %1571 = vmatprep.subr.bf16.mxu1 %v2633_v57  ;;  %v2679_v14 = vcombine.high %v1042_v11, %v1046_v12  ;;  %v2678_v15 = vcombine.low %v1042_v11, %v1046_v12  ;;  %v3452_v16 = vld [vmem:[%s3769_s2] ss:$0 sm:$0xff] }
  0xf5   : > { %v392_v30 = vpop.trf.xlu0 }
  0xf6   : > { %2749 = vmatprep.mubr.msk.bf16.mxu0 %vm440_vm0, %v392_v30  ;;  %v1007_v30 = vld [vmem:[#allocation8 + $0x68] sm:$0xff] }
  0xf7   : > { %v408_v36 = vpop.trf.xlu1  ;;  %v2640_v46 = vcombine.low %v1003_v29, %v1007_v30 }
  0xf9   : > { %v393_v31 = vpop.trf.xlu0 }
  0xfa   : > { %2750 = vmatmul.mubr.msk.bf16.vlgmr.msra.gmra.mrb[0].mxu0 %vm440_vm0, %v393_v31 }
  0xfb   : > { %v409_v39 = vpop.trf.xlu1  ;;  %1379 = vmatpush1.bf16.msra.mxu0 %v2630_v51  ;;  %v1019_v51 = vld [vmem:[#allocation8 + $0xc8] sm:$0xff] }
  0xfc   : > { %1380 = vmatprep.subr.bf16.mxu0 %v2639_v58  ;;  %v2656_v4 = vcombine.low %v1019_v51, %v1023_v52 }
  0xfd   : > { %v394_v32 = vpop.trf.xlu0 }
  0xfe   : > { %2753 = vmatprep.mubr.msk.bf16.mxu0 %vm440_vm0, %v394_v32 }
  0xff   : > { %v410_v40 = vpop.trf.xlu1  ;;  %1381 = vmatpush1.bf16.msra.mxu0 %v2638_v61  ;;  %v2657_v61 = vcombine.high %v1019_v51, %v1023_v52 }
 0x100   : > { %1382 = vmatprep.subr.bf16.mxu0 %v2647_v62  ;;  %v1031_v62 = vld [vmem:[#allocation8 + $0x128] sm:$0xff] }
 0x101   : > { %v395_v33 = vpop.trf.xlu0 }
 0x102   : > { %2754 = vmatmul.mubr.msk.bf16.gmra.mrb[4].mxu0 %vm440_vm0, %v395_v33 }
 0x103   : > { %v411_v41 = vpop.trf.xlu1  ;;  %1383 = vmatpush1.bf16.msra.mxu0 %v2646_v1 }
 0x104   : > { %1384 = vmatprep.subr.bf16.mxu0 %v2655_v2 }
 0x105   : > { %v396_v34 = vpop.trf.xlu0 }
 0x106   : > { %2757 = vmatprep.mubr.msk.bf16.mxu0 %vm440_vm0, %v396_v34 }
 0x107   : > { %v412_v42 = vpop.trf.xlu1  ;;  %1385 = vmatpush1.bf16.msra.mxu0 %v2654_v5 }
 0x108   : > { %1386 = vmatprep.subr.bf16.mxu0 %v2663_v6 }
 0x109   : > { %v397_v35 = vpop.trf.xlu0 }
 0x10a   : > { %2758 = vmatmul.mubr.msk.bf16.gmra.mrb[8].mxu0 %vm440_vm0, %v397_v35 }
 0x10b   : > { %v413_v43 = vpop.trf.xlu1  ;;  %1387 = vmatpush1.bf16.msra.mxu0 %v2662_v9  ;;  %v1039_v9 = vld [vmem:[#allocation8 + $0x168] sm:$0xff] }
 0x10c   : > { %1388 = vmatprep.subr.bf16.mxu0 %v2671_v10 }
 0x10d   : > { %v398_v37 = vpop.trf.xlu0 }
 0x10e   : > { %2761 = vmatprep.mubr.msk.bf16.mxu0 %vm440_vm0, %v398_v37 }
 0x10f   : > { %v414_v44 = vpop.trf.xlu1  ;;  %1389 = vmatpush1.bf16.msra.mxu0 %v2670_v13 }
 0x110   : > { %1390 = vmatprep.subr.bf16.mxu0 %v2679_v14 }
 0x111   : > { %v399_v38 = vpop.trf.xlu0 }
 0x112   : > { %2762 = vmatmul.mubr.msk.bf16.gmra.mrb[12].mxu0 %vm440_vm0, %v399_v38 }
 0x113   : > { %2765 = vmatprep.mubr.msk.bf16.mxu0 %vm440_vm0, %v408_v36  ;;  %v415_v45 = vpop.trf.xlu1  ;;  %1391 = vmatpush1.bf16.msra.mxu0 %v2678_v15  ;;  %v2641_v36 = vcombine.high %v1003_v29, %v1007_v30 }
 0x11a   : > { %2766 = vmatmul.mubr.msk.bf16.gmra.mrb[16].mxu0 %vm440_vm0, %v409_v39  ;;  %v1011_v39 = vld [vmem:[#allocation8 + $0x88] sm:$0xff] }
 0x11b   : > { %2769 = vmatprep.mubr.msk.bf16.mxu0 %vm440_vm0, %v410_v40  ;;  %v1015_v40 = vld [vmem:[#allocation8 + $0xa8] sm:$0xff] }
 0x11c   : > { %v2649_v48 = vcombine.high %v1011_v39, %v1015_v40  ;;  %v2648_v58 = vcombine.low %v1011_v39, %v1015_v40 }
 0x122   : > { %2770 = vmatmul.mubr.msk.bf16.gmra.mrb[20].mxu0 %vm440_vm0, %v411_v41 }
 0x123   : > { %2773 = vmatprep.mubr.msk.bf16.mxu0 %vm440_vm0, %v412_v42 }
 0x12a   : > { %2774 = vmatmul.mubr.msk.bf16.gmra.mrb[24].mxu0 %vm440_vm0, %v413_v43 }
 0x12b   : > { %2777 = vmatprep.mubr.msk.bf16.mxu0 %vm440_vm0, %v414_v44 }
 0x132   : > { %2778 = vmatmul.mubr.msk.bf16.gmra.mrb[28].mxu0 %vm440_vm0, %v415_v45 }
 0x1cd   : > { %v2751_v17 = vpop.f32.mrb[0].mxu0 }
 0x1ce   : > { %v532_v18 = vadd.f32 %v2751_v17, %v3452_v16  ;;  %v523_v19 = vpop.f32.mrb[1].mxu0  ;;  %v2673_v17 = vcombine.high %v1035_v8, %v1039_v9 }
 0x1cf   : > { %v524_v20 = vadd.f32 %v3452_v16, %v523_v19  ;;  %v2752_v21 = vpop.f32.mrb[2].mxu0 }
 0x1d0   : > { %v535_v22 = vadd.f32 %v2752_v21, %v3452_v16  ;;  %v526_v23 = vpop.f32.mrb[3].mxu0  ;;  %v652_v25 = vmax.f32 %v532_v18, 0.0  ;;  %v1047_v21 = vld [vmem:[#allocation8 + $0x1a8] sm:$0xff] }
 0x1d1   : > { %v527_v24 = vadd.f32 %v3452_v16, %v526_v23  ;;  %v650_v27 = vmax.f32 %v524_v20, 0.0  ;;  %v1043_v20 = vld [vmem:[#allocation8 + $0x188] sm:$0xff] }
 0x1d2   : > { %v653_v26 = vmax.f32 %v535_v22, 0.0  ;;  %v2681_v29 = vcombine.high %v1043_v20, %v1047_v21 }
 0x1d3   : > { %v651_v28 = vmax.f32 %v527_v24, 0.0 }
 0x1d4   : > { %v683_v31 = vpack.c.bf16 %v653_v26, %v652_v25 }
 0x1d5   : > { %v2755_v32 = vpop.f32.mrb[4].mxu0  ;;  %v682_v33 = vpack.c.bf16 %v651_v28, %v650_v27  ;;  %v2672_v27 = vcombine.low %v1035_v8, %v1039_v9 }
 0x1d6   : > { %v548_v34 = vadd.f32 %v2755_v32, %v3452_v16  ;;  %v539_v35 = vpop.f32.mrb[5].mxu0 }
 0x1d7   : > { %v540_v37 = vadd.f32 %v3452_v16, %v539_v35  ;;  %2789 = vmatprep.mubr.msk.bf16.mxu1 %vm440_vm0, %v682_v33  ;;  %v2756_v38 = vpop.f32.mrb[6].mxu0 }
 0x1d8   : > { %v656_v41 = vmax.f32 %v548_v34, 0.0  ;;  %v551_v42 = vadd.f32 %v2756_v38, %v3452_v16  ;;  %2790 = vmatmul.mubr.msk.bf16.vlgmr.msra.gmra.mrb[0].mxu1 %vm440_vm0, %v683_v31  ;;  %v542_v43 = vpop.f32.mrb[7].mxu0  ;;  %v2680_v34 = vcombine.low %v1043_v20, %v1047_v21 }
 0x1d9   : > { %v654_v44 = vmax.f32 %v540_v37, 0.0  ;;  %v543_v45 = vadd.f32 %v3452_v16, %v542_v43  ;;  %1572 = vmatpush1.bf16.msra.mxu1 %v2632_v56  ;;  %v1027_v56 = vld [vmem:[#allocation8 + $0x108] sm:$0xff] }
 0x1da   : > { %v657_v47 = vmax.f32 %v551_v42, 0.0  ;;  %1573 = vmatprep.subr.bf16.mxu1 %v2641_v36  ;;  %v2665_v6 = vcombine.high %v1027_v56, %v1031_v62  ;;  %v2664_v13 = vcombine.low %v1027_v56, %v1031_v62 }
 0x1db   : > { %v655_v49 = vmax.f32 %v543_v45, 0.0 }
 0x1dc   : > { %v685_v54 = vpack.c.bf16 %v657_v47, %v656_v41 }
 0x1dd   : > { %v684_v55 = vpack.c.bf16 %v655_v49, %v654_v44  ;;  %v2759_v57 = vpop.f32.mrb[8].mxu0  ;;  %1574 = vmatpush1.bf16.msra.mxu1 %v2640_v46 }
 0x1de   : > { %v564_v59 = vadd.f32 %v2759_v57, %v3452_v16  ;;  %v555_v60 = vpop.f32.mrb[9].mxu0  ;;  %1575 = vmatprep.subr.bf16.mxu1 %v2649_v48 }
 0x1df   : > { %2793 = vmatprep.mubr.msk.bf16.mxu1 %vm440_vm0, %v684_v55  ;;  %v556_v50 = vadd.f32 %v3452_v16, %v555_v60  ;;  %v2760_v53 = vpop.f32.mrb[10].mxu0 }
 0x1e0   : > { %2794 = vmatmul.mubr.msk.bf16.gmra.mrb[4].mxu1 %vm440_vm0, %v685_v54  ;;  %v660_v63 = vmax.f32 %v564_v59, 0.0  ;;  %v567_v0 = vadd.f32 %v2760_v53, %v3452_v16  ;;  %v558_v1 = vpop.f32.mrb[11].mxu0 }
 0x1e1   : > { %v658_v2 = vmax.f32 %v556_v50, 0.0  ;;  %v559_v3 = vadd.f32 %v3452_v16, %v558_v1  ;;  %1576 = vmatpush1.bf16.msra.mxu1 %v2648_v58 }
 0x1e2   : > { %v661_v5 = vmax.f32 %v567_v0, 0.0  ;;  %1577 = vmatprep.subr.bf16.mxu1 %v2657_v61 }
 0x1e3   : > { %v659_v7 = vmax.f32 %v559_v3, 0.0 }
 0x1e4   : > { %v687_v10 = vpack.c.bf16 %v661_v5, %v660_v63 }
 0x1e5   : > { %v686_v11 = vpack.c.bf16 %v659_v7, %v658_v2  ;;  %v2763_v12 = vpop.f32.mrb[12].mxu0  ;;  %1578 = vmatpush1.bf16.msra.mxu1 %v2656_v4 }
 0x1e6   : > { %v580_v14 = vadd.f32 %v2763_v12, %v3452_v16  ;;  %v571_v15 = vpop.f32.mrb[13].mxu0  ;;  %1579 = vmatprep.subr.bf16.mxu1 %v2665_v6 }
 0x1e7   : > { %2797 = vmatprep.mubr.msk.bf16.mxu1 %vm440_vm0, %v686_v11  ;;  %v572_v18 = vadd.f32 %v3452_v16, %v571_v15  ;;  %v2764_v19 = vpop.f32.mrb[14].mxu0 }
 0x1e8   : > { %2798 = vmatmul.mubr.msk.bf16.gmra.mrb[8].mxu1 %vm440_vm0, %v687_v10  ;;  %v664_v22 = vmax.f32 %v580_v14, 0.0  ;;  %v583_v23 = vadd.f32 %v2764_v19, %v3452_v16  ;;  %v574_v24 = vpop.f32.mrb[15].mxu0 }
 0x1e9   : > { %v662_v25 = vmax.f32 %v572_v18, 0.0  ;;  %v575_v26 = vadd.f32 %v3452_v16, %v574_v24  ;;  %1580 = vmatpush1.bf16.msra.mxu1 %v2664_v13 }
 0x1ea   : > { %v665_v28 = vmax.f32 %v583_v23, 0.0  ;;  %1581 = vmatprep.subr.bf16.mxu1 %v2673_v17 }
 0x1eb   : > { %v663_v30 = vmax.f32 %v575_v26, 0.0 }
 0x1ec   : > { %v689_v31 = vpack.c.bf16 %v665_v28, %v664_v22  ;;  %v1054_v28 = vld [vmem:[#allocation8 + $0x1e0] sm:$0xff] }
 0x1ed   : > { %v688_v32 = vpack.c.bf16 %v663_v30, %v662_v25  ;;  %v2767_v33 = vpop.f32.mrb[16].mxu0  ;;  %1582 = vmatpush1.bf16.msra.mxu1 %v2672_v27  ;;  %v1050_v27 = vld [vmem:[#allocation8 + $0x1c0] sm:$0xff] }
 0x1ee   : > { %v596_v35 = vadd.f32 %v2767_v33, %v3452_v16  ;;  %v587_v36 = vpop.f32.mrb[17].mxu0  ;;  %1583 = vmatprep.subr.bf16.mxu1 %v2681_v29  ;;  %v1051_v29 = vld [vmem:[#allocation8 + $0x1c8] sm:$0xff]  ;;  %v2686_v30 = vcombine.low %v1050_v27, %v1054_v28 }
 0x1ef   : > { %2801 = vmatprep.mubr.msk.bf16.mxu1 %vm440_vm0, %v688_v32  ;;  %v588_v37 = vadd.f32 %v3452_v16, %v587_v36  ;;  %v2768_v38 = vpop.f32.mrb[18].mxu0  ;;  %v1055_v32 = vld [vmem:[#allocation8 + $0x1e8] sm:$0xff]  ;;  %v1000_v36 = vld [vmem:[#allocation8 + $0x30] sm:$0xff] }
 0x1f0   : > { %2802 = vmatmul.mubr.msk.bf16.gmra.mrb[12].mxu1 %vm440_vm0, %v689_v31  ;;  %v668_v39 = vmax.f32 %v596_v35, 0.0  ;;  %v599_v40 = vadd.f32 %v2768_v38, %v3452_v16  ;;  %v590_v41 = vpop.f32.mrb[19].mxu0  ;;  %v2687_v31 = vcombine.high %v1050_v27, %v1054_v28  ;;  %v2688_v33 = vcombine.low %v1051_v29, %v1055_v32  ;;  %v996_v35 = vld [vmem:[#allocation8 + $0x10] sm:$0xff] }
 0x1f1   : > { %v666_v42 = vmax.f32 %v588_v37, 0.0  ;;  %v591_v43 = vadd.f32 %v3452_v16, %v590_v41  ;;  %1584 = vmatpush1.bf16.msra.mxu1 %v2680_v34  ;;  %v2689_v34 = vcombine.high %v1051_v29, %v1055_v32  ;;  %v997_v37 = vld [vmem:[#allocation8 + $0x18] sm:$0xff]  ;;  %v2634_v38 = vcombine.low %v996_v35, %v1000_v36 }
 0x1f2   : > { %v669_v44 = vmax.f32 %v599_v40, 0.0  ;;  %1392 = vmatprep.subr.bf16.mxu0 %v2687_v31  ;;  %v1001_v40 = vld [vmem:[#allocation8 + $0x38] sm:$0xff] }
 0x1f3   : > { %v667_v45 = vmax.f32 %v591_v43, 0.0  ;;  %1585 = vmatprep.subr.bf16.mxu1 %v2689_v34  ;;  %1393 = vmatpush1.bf16.msra.mxu0 %v2686_v30  ;;  %v2636_v41 = vcombine.low %v997_v37, %v1001_v40  ;;  %v3510_v43 = vld [vmem:[%s3771_s4] ss:$0 sm:$0xff]  ;;  %v1028_v34 = vld [vmem:[#allocation8 + $0x110] sm:$0xff] }
 0x1f4   : > { %v691_v46 = vpack.c.bf16 %v669_v44, %v668_v39  ;;  %v2635_v39 = vcombine.high %v996_v35, %v1000_v36 }
 0x1f5   : > { %v690_v47 = vpack.c.bf16 %v667_v45, %v666_v42  ;;  %v2771_v48 = vpop.f32.mrb[20].mxu0  ;;  %1586 = vmatpush1.bf16.msra.mxu1 %v2688_v33  ;;  %v2637_v42 = vcombine.high %v997_v37, %v1001_v40  ;;  %v1032_v37 = vld [vmem:[#allocation8 + $0x130] sm:$0xff] }
 0x1f6   : > { %v612_v49 = vadd.f32 %v2771_v48, %v3452_v16  ;;  %v603_v51 = vpop.f32.mrb[21].mxu0  ;;  %1764 = vmatprep.subr.bf16.mxu0 %v2635_v39  ;;  %v1033_v39 = vld [vmem:[#allocation8 + $0x138] sm:$0xff] }
 0x1f7   : > { %2805 = vmatprep.mubr.msk.bf16.mxu1 %vm440_vm0, %v690_v47  ;;  %v604_v52 = vadd.f32 %v3452_v16, %v603_v51  ;;  %v2772_v54 = vpop.f32.mrb[22].mxu0  ;;  %1957 = vmatprep.subr.bf16.mxu1 %v2637_v42 }
 0x1f8   : > { %2806 = vmatmul.mubr.msk.bf16.gmra.mrb[16].mxu1 %vm440_vm0, %v691_v46  ;;  %v672_v55 = vmax.f32 %v612_v49, 0.0  ;;  %v615_v57 = vadd.f32 %v2772_v54, %v3452_v16  ;;  %v606_v58 = vpop.f32.mrb[23].mxu0 }
 0x1f9   : > { %v670_v59 = vmax.f32 %v604_v52, 0.0  ;;  %v607_v60 = vadd.f32 %v3452_v16, %v606_v58 }
 0x1fa   : > { %v673_v61 = vmax.f32 %v615_v57, 0.0  ;;  %v1004_v57 = vld [vmem:[#allocation8 + $0x50] sm:$0xff] }
 0x1fb   : > { %v671_v50 = vmax.f32 %v607_v60, 0.0  ;;  %v1008_v60 = vld [vmem:[#allocation8 + $0x70] sm:$0xff] }
 0x1fc   : > { %v693_v53 = vpack.c.bf16 %v673_v61, %v672_v55  ;;  %v1005_v61 = vld [vmem:[#allocation8 + $0x58] sm:$0xff] }
 0x1fd   : > { %v692_v56 = vpack.c.bf16 %v671_v50, %v670_v59  ;;  %v2775_v62 = vpop.f32.mrb[24].mxu0  ;;  %v1009_v50 = vld [vmem:[#allocation8 + $0x78] sm:$0xff] }
 0x1fe   : > { %v628_v63 = vadd.f32 %v2775_v62, %v3452_v16  ;;  %v619_v0 = vpop.f32.mrb[25].mxu0 }
 0x1ff   : > { %2809 = vmatprep.mubr.msk.bf16.mxu1 %vm440_vm0, %v692_v56  ;;  %v620_v1 = vadd.f32 %v3452_v16, %v619_v0  ;;  %v2776_v2 = vpop.f32.mrb[26].mxu0 }
 0x200   : > { %2810 = vmatmul.mubr.msk.bf16.gmra.mrb[20].mxu1 %vm440_vm0, %v693_v53  ;;  %v676_v3 = vmax.f32 %v628_v63, 0.0  ;;  %v631_v4 = vadd.f32 %v2776_v2, %v3452_v16  ;;  %v622_v5 = vpop.f32.mrb[27].mxu0  ;;  %v1012_v63 = vld [vmem:[#allocation8 + $0x90] sm:$0xff]  ;;  %v2643_v2 = vcombine.high %v1004_v57, %v1008_v60 }
 0x201   : > { %v674_v6 = vmax.f32 %v620_v1, 0.0  ;;  %v623_v7 = vadd.f32 %v3452_v16, %v622_v5  ;;  %v1013_v5 = vld [vmem:[#allocation8 + $0x98] sm:$0xff] }
 0x202   : > { %v677_v8 = vmax.f32 %v631_v4, 0.0  ;;  %v1016_v4 = vld [vmem:[#allocation8 + $0xb0] sm:$0xff] }
 0x203   : > { %v675_v9 = vmax.f32 %v623_v7, 0.0  ;;  %v2650_v28 = vcombine.low %v1012_v63, %v1016_v4 }
 0x204   : > { %v695_v10 = vpack.c.bf16 %v677_v8, %v676_v3  ;;  %v2645_v3 = vcombine.high %v1005_v61, %v1009_v50 }
 0x205   : > { %v694_v11 = vpack.c.bf16 %v675_v9, %v674_v6  ;;  %v2779_v12 = vpop.f32.mrb[28].mxu0  ;;  %v1017_v6 = vld [vmem:[#allocation8 + $0xb8] sm:$0xff] }
 0x206   : > { %v644_v13 = vadd.f32 %v2779_v12, %v3452_v16  ;;  %v635_v14 = vpop.f32.mrb[29].mxu0  ;;  %v2642_v12 = vcombine.low %v1004_v57, %v1008_v60  ;;  %v2652_v29 = vcombine.low %v1013_v5, %v1017_v6  ;;  %v1037_v57 = vld [vmem:[#allocation8 + $0x158] sm:$0xff] }
 0x207   : > { %2813 = vmatprep.mubr.msk.bf16.mxu1 %vm440_vm0, %v694_v11  ;;  %v636_v15 = vadd.f32 %v3452_v16, %v635_v14  ;;  %v2780_v17 = vpop.f32.mrb[30].mxu0 }
 0x208   : > { %2814 = vmatmul.mubr.msk.bf16.gmra.mrb[24].mxu1 %vm440_vm0, %v695_v10  ;;  %v680_v18 = vmax.f32 %v644_v13, 0.0  ;;  %v647_v19 = vadd.f32 %v2780_v17, %v3452_v16  ;;  %v638_v20 = vpop.f32.mrb[31].mxu0  ;;  %v2644_v13 = vcombine.low %v1005_v61, %v1009_v50  ;;  %v2651_v17 = vcombine.high %v1012_v63, %v1016_v4 }
 0x209   : > { %v678_v21 = vmax.f32 %v636_v15, 0.0  ;;  %v639_v22 = vadd.f32 %v3452_v16, %v638_v20  ;;  %v3145_v16 = vmov 0   ;;  %v1020_v20 = vld [vmem:[#allocation8 + $0xd0] sm:$0xff]  ;;  %v2666_v50 = vcombine.low %v1028_v34, %v1032_v37 }
 0x20a   : > { %v681_v23 = vmax.f32 %v647_v19, 0.0  ;;  %1410 = vmatprep.mubr.bf16.mxu0 %v3145_v16 }
 0x20b   : > { %v679_v24 = vmax.f32 %v639_v22, 0.0  ;;  %v1024_v22 = vld [vmem:[#allocation8 + $0xf0] sm:$0xff] }
 0x20c   : > { %v697_v25 = vpack.c.bf16 %v681_v23, %v680_v18  ;;  %v2653_v18 = vcombine.high %v1013_v5, %v1017_v6  ;;  %v1021_v23 = vld [vmem:[#allocation8 + $0xd8] sm:$0xff]  ;;  %v2659_v32 = vcombine.high %v1020_v20, %v1024_v22  ;;  %v1048_v6 = vld [vmem:[#allocation8 + $0x1b0] sm:$0xff] }
 0x20d   : > { %v696_v26 = vpack.c.bf16 %v679_v24, %v678_v21  ;;  %v1025_v24 = vld [vmem:[#allocation8 + $0xf8] sm:$0xff] }
 0x20e   : > { %v2661_v33 = vcombine.high %v1021_v23, %v1025_v24 }
 0x20f   : > { %2817 = vmatprep.mubr.msk.bf16.mxu1 %vm440_vm0, %v696_v26 }
 0x210   : > { %2818 = vmatmul.mubr.msk.bf16.gmra.mrb[28].mxu1 %vm440_vm0, %v697_v25 }
 0x211   : > { %1603 = vmatprep.mubr.bf16.mxu1 %v3145_v16 }
 0x2ab   : > { %v2791_v44 = vpop.f32.mrb[0].mxu1 }
 0x2ac   : > { %v828_v45 = vadd.f32 %v2791_v44, %v3510_v43  ;;  %v819_v46 = vpop.f32.mrb[1].mxu1 }
 0x2ad   : > { %v820_v47 = vadd.f32 %v3510_v43, %v819_v46  ;;  %v2792_v48 = vpop.f32.mrb[2].mxu1  ;;  %v2658_v46 = vcombine.low %v1020_v20, %v1024_v22  ;;  %v1052_v20 = vld [vmem:[#allocation8 + $0x1d0] sm:$0xff] }
 0x2ae   : > { %v831_v49 = vadd.f32 %v2792_v48, %v3510_v43  ;;  %v822_v51 = vpop.f32.mrb[3].mxu1  ;;  %v948_v54 = vmax.f32 %v828_v45, 0.0  ;;  %v1056_v22 = vld [vmem:[#allocation8 + $0x1f0] sm:$0xff] }
 0x2af   : > { %v823_v52 = vadd.f32 %v3510_v43, %v822_v51  ;;  %v946_v58 = vmax.f32 %v820_v47, 0.0  ;;  %v2660_v47 = vcombine.low %v1021_v23, %v1025_v24  ;;  %v1053_v23 = vld [vmem:[#allocation8 + $0x1d8] sm:$0xff] }
 0x2b0   : > { %v949_v55 = vmax.f32 %v831_v49, 0.0  ;;  %v2667_v49 = vcombine.high %v1028_v34, %v1032_v37  ;;  %v1057_v24 = vld [vmem:[#allocation8 + $0x1f8] sm:$0xff]  ;;  %v2691_v34 = vcombine.high %v1052_v20, %v1056_v22 }
 0x2b1   : > { %v947_v59 = vmax.f32 %v823_v52, 0.0  ;;  %v1036_v52 = vld [vmem:[#allocation8 + $0x150] sm:$0xff] }
 0x2b2   : > { %v3516_v53 = vpack.c.bf16 %v949_v55, %v948_v54  ;;  %v1040_v55 = vld [vmem:[#allocation8 + $0x170] sm:$0xff] }
 0x2b3   : > { %v3518_v56 = vpack.c.bf16 %v947_v59, %v946_v58  ;;  %v2795_v62 = vpop.f32.mrb[4].mxu1  ;;  %v1041_v58 = vld [vmem:[#allocation8 + $0x178] sm:$0xff] }
 0x2b4   : > { %v844_v0 = vadd.f32 %v2795_v62, %v3510_v43  ;;  %v835_v1 = vpop.f32.mrb[5].mxu1 }
 0x2b5   : > { %v836_v7 = vadd.f32 %v3510_v43, %v835_v1  ;;  %1411 = vmatmul.mubr.bf16.vlgmr.msra.gmra.mrb[32].mxu0 %v3518_v56  ;;  %1604 = vmatmul.mubr.bf16.vlgmr.msra.gmra.mrb[32].mxu1 %v3518_v56  ;;  %v2796_v8 = vpop.f32.mrb[6].mxu1  ;;  %v2675_v1 = vcombine.high %v1036_v52, %v1040_v55 }
 0x2b6   : > { %v952_v9 = vmax.f32 %v844_v0, 0.0  ;;  %1765 = vmatpush1.bf16.msra.mxu0 %v2634_v38  ;;  %1958 = vmatpush1.bf16.msra.mxu1 %v2636_v41  ;;  %v847_v10 = vadd.f32 %v2796_v8, %v3510_v43  ;;  %v838_v11 = vpop.f32.mrb[7].mxu1  ;;  %v1029_v38 = vld [vmem:[#allocation8 + $0x118] sm:$0xff] }
 0x2b7   : > { %v950_v14 = vmax.f32 %v836_v7, 0.0  ;;  %v839_v15 = vadd.f32 %v3510_v43, %v838_v11  ;;  %1420 = vmatprep.mubr.bf16.mxu0 %v3145_v16  ;;  %1613 = vmatprep.mubr.bf16.mxu1 %v3145_v16  ;;  %v2669_v51 = vcombine.high %v1029_v38, %v1033_v39  ;;  %v2668_v62 = vcombine.low %v1029_v38, %v1033_v39  ;;  %v1045_v7 = vld [vmem:[#allocation8 + $0x198] sm:$0xff] }
 0x2b8   : > { %v953_v19 = vmax.f32 %v847_v10, 0.0  ;;  %1766 = vmatprep.subr.bf16.mxu0 %v2643_v2  ;;  %1959 = vmatprep.subr.bf16.mxu1 %v2645_v3  ;;  %v2677_v2 = vcombine.high %v1037_v57, %v1041_v58  ;;  %v1044_v3 = vld [vmem:[#allocation8 + $0x190] sm:$0xff]  ;;  %v1049_v8 = vld [vmem:[#allocation8 + $0x1b8] sm:$0xff] }
 0x2b9   : > { %v951_v21 = vmax.f32 %v839_v15, 0.0  ;;  %v2676_v15 = vcombine.low %v1037_v57, %v1041_v58 }
 0x2ba   : > { %v3528_v25 = vpack.c.bf16 %v953_v19, %v952_v9  ;;  %1767 = vmatpush1.bf16.msra.mxu0 %v2642_v12  ;;  %1960 = vmatpush1.bf16.msra.mxu1 %v2644_v13  ;;  %v2685_v19 = vcombine.high %v1045_v7, %v1049_v8 }
 0x2bb   : > { %v3530_v26 = vpack.c.bf16 %v951_v21, %v950_v14  ;;  %v2799_v27 = vpop.f32.mrb[8].mxu1  ;;  %1768 = vmatprep.subr.bf16.mxu0 %v2651_v17  ;;  %1961 = vmatprep.subr.bf16.mxu1 %v2653_v18  ;;  %v2674_v14 = vcombine.low %v1036_v52, %v1040_v55  ;;  %v2683_v18 = vcombine.high %v1044_v3, %v1048_v6 }
 0x2bc   : > { %v860_v30 = vadd.f32 %v2799_v27, %v3510_v43  ;;  %v851_v31 = vpop.f32.mrb[9].mxu1 }
 0x2bd   : > { %1421 = vmatmul.mubr.bf16.gmra.mrb[36].mxu0 %v3516_v53  ;;  %1614 = vmatmul.mubr.bf16.gmra.mrb[36].mxu1 %v3516_v53  ;;  %v852_v35 = vadd.f32 %v3510_v43, %v851_v31  ;;  %v2800_v36 = vpop.f32.mrb[10].mxu1  ;;  %v2684_v31 = vcombine.low %v1045_v7, %v1049_v8 }
 0x2be   : > { %v956_v40 = vmax.f32 %v860_v30, 0.0  ;;  %1430 = vmatprep.mubr.bf16.mxu0 %v3145_v16  ;;  %1623 = vmatprep.mubr.bf16.mxu1 %v3145_v16  ;;  %v863_v41 = vadd.f32 %v2800_v36, %v3510_v43  ;;  %v854_v42 = vpop.f32.mrb[11].mxu1  ;;  %v2682_v30 = vcombine.low %v1044_v3, %v1048_v6 }
 0x2bf   : > { %v954_v44 = vmax.f32 %v852_v35, 0.0  ;;  %v855_v45 = vadd.f32 %v3510_v43, %v854_v42  ;;  %1769 = vmatpush1.bf16.msra.mxu0 %v2650_v28  ;;  %1962 = vmatpush1.bf16.msra.mxu1 %v2652_v29  ;;  %v2693_v35 = vcombine.high %v1053_v23, %v1057_v24 }
 0x2c0   : > { %v957_v48 = vmax.f32 %v863_v41, 0.0  ;;  %1770 = vmatprep.subr.bf16.mxu0 %v2659_v32  ;;  %1963 = vmatprep.subr.bf16.mxu1 %v2661_v33 }
 0x2c1   : > { %v955_v54 = vmax.f32 %v855_v45, 0.0  ;;  %v2692_v45 = vcombine.low %v1053_v23, %v1057_v24 }
 0x2c2   : > { %v3540_v59 = vpack.c.bf16 %v957_v48, %v956_v40 }
 0x2c3   : > { %v3542_v60 = vpack.c.bf16 %v955_v54, %v954_v44  ;;  %v2803_v61 = vpop.f32.mrb[12].mxu1  ;;  %1771 = vmatpush1.bf16.msra.mxu0 %v2658_v46  ;;  %1964 = vmatpush1.bf16.msra.mxu1 %v2660_v47  ;;  %v2690_v44 = vcombine.low %v1052_v20, %v1056_v22 }
 0x2c4   : > { %v876_v63 = vadd.f32 %v2803_v61, %v3510_v43  ;;  %v867_v0 = vpop.f32.mrb[13].mxu1  ;;  %1772 = vmatprep.subr.bf16.mxu0 %v2667_v49  ;;  %1965 = vmatprep.subr.bf16.mxu1 %v2669_v51 }
 0x2c5   : > { %1431 = vmatmul.mubr.bf16.gmra.mrb[40].mxu0 %v3530_v26  ;;  %1624 = vmatmul.mubr.bf16.gmra.mrb[40].mxu1 %v3530_v26  ;;  %v868_v4 = vadd.f32 %v3510_v43, %v867_v0  ;;  %v2804_v5 = vpop.f32.mrb[14].mxu1 }
 0x2c6   : > { %1440 = vmatprep.mubr.bf16.mxu0 %v3145_v16  ;;  %1633 = vmatprep.mubr.bf16.mxu1 %v3145_v16  ;;  %v960_v9 = vmax.f32 %v876_v63, 0.0  ;;  %v879_v10 = vadd.f32 %v2804_v5, %v3510_v43  ;;  %v870_v11 = vpop.f32.mrb[15].mxu1 }
 0x2c7   : > { %v958_v12 = vmax.f32 %v868_v4, 0.0  ;;  %v871_v13 = vadd.f32 %v3510_v43, %v870_v11  ;;  %1773 = vmatpush1.bf16.msra.mxu0 %v2666_v50  ;;  %1966 = vmatpush1.bf16.msra.mxu1 %v2668_v62 }
 0x2c8   : > { %v961_v17 = vmax.f32 %v879_v10, 0.0  ;;  %1774 = vmatprep.subr.bf16.mxu0 %v2675_v1  ;;  %1967 = vmatprep.subr.bf16.mxu1 %v2677_v2 }
 0x2c9   : > { %v959_v21 = vmax.f32 %v871_v13, 0.0 }
 0x2ca   : > { %v3552_v27 = vpack.c.bf16 %v961_v17, %v960_v9 }
 0x2cb   : > { %v3554_v28 = vpack.c.bf16 %v959_v21, %v958_v12  ;;  %v2807_v29 = vpop.f32.mrb[16].mxu1  ;;  %1775 = vmatpush1.bf16.msra.mxu0 %v2674_v14  ;;  %1968 = vmatpush1.bf16.msra.mxu1 %v2676_v15 }
 0x2cc   : > { %v892_v32 = vadd.f32 %v2807_v29, %v3510_v43  ;;  %v883_v33 = vpop.f32.mrb[17].mxu1  ;;  %1776 = vmatprep.subr.bf16.mxu0 %v2683_v18  ;;  %1969 = vmatprep.subr.bf16.mxu1 %v2685_v19 }
 0x2cd   : > { %1441 = vmatmul.mubr.bf16.gmra.mrb[44].mxu0 %v3528_v25  ;;  %1634 = vmatmul.mubr.bf16.gmra.mrb[44].mxu1 %v3528_v25  ;;  %v884_v36 = vadd.f32 %v3510_v43, %v883_v33  ;;  %v2808_v37 = vpop.f32.mrb[18].mxu1 }
 0x2ce   : > { %1450 = vmatprep.mubr.bf16.mxu0 %v3145_v16  ;;  %1643 = vmatprep.mubr.bf16.mxu1 %v3145_v16  ;;  %v964_v38 = vmax.f32 %v892_v32, 0.0  ;;  %v895_v39 = vadd.f32 %v2808_v37, %v3510_v43  ;;  %v886_v40 = vpop.f32.mrb[19].mxu1 }
 0x2cf   : > { %v962_v41 = vmax.f32 %v884_v36, 0.0  ;;  %v887_v42 = vadd.f32 %v3510_v43, %v886_v40  ;;  %1777 = vmatpush1.bf16.msra.mxu0 %v2682_v30  ;;  %1970 = vmatpush1.bf16.msra.mxu1 %v2684_v31 }
 0x2d0   : > { %v965_v46 = vmax.f32 %v895_v39, 0.0  ;;  %1778 = vmatprep.subr.bf16.mxu0 %v2691_v34  ;;  %1971 = vmatprep.subr.bf16.mxu1 %v2693_v35 }
 0x2d1   : > { %v963_v47 = vmax.f32 %v887_v42, 0.0 }
 0x2d2   : > { %v3564_v48 = vpack.c.bf16 %v965_v46, %v964_v38 }
 0x2d3   : > { %v3566_v49 = vpack.c.bf16 %v963_v47, %v962_v41  ;;  %v2811_v51 = vpop.f32.mrb[20].mxu1  ;;  %1779 = vmatpush1.bf16.msra.mxu0 %v2690_v44  ;;  %1972 = vmatpush1.bf16.msra.mxu1 %v2692_v45 }
 0x2d4   : > { %v908_v52 = vadd.f32 %v2811_v51, %v3510_v43  ;;  %v899_v54 = vpop.f32.mrb[21].mxu1 }
 0x2d5   : > { %1451 = vmatmul.mubr.bf16.gmra.mrb[48].mxu0 %v3542_v60  ;;  %1644 = vmatmul.mubr.bf16.gmra.mrb[48].mxu1 %v3542_v60  ;;  %v900_v55 = vadd.f32 %v3510_v43, %v899_v54  ;;  %v2812_v57 = vpop.f32.mrb[22].mxu1 }
 0x2d6   : > { %1460 = vmatprep.mubr.bf16.mxu0 %v3145_v16  ;;  %1653 = vmatprep.mubr.bf16.mxu1 %v3145_v16  ;;  %v968_v58 = vmax.f32 %v908_v52, 0.0  ;;  %v911_v61 = vadd.f32 %v2812_v57, %v3510_v43  ;;  %v902_v50 = vpop.f32.mrb[23].mxu1 }
 0x2d7   : > { %v966_v62 = vmax.f32 %v900_v55, 0.0  ;;  %v903_v63 = vadd.f32 %v3510_v43, %v902_v50 }
 0x2d8   : > { %v969_v0 = vmax.f32 %v911_v61, 0.0 }
 0x2d9   : > { %v967_v1 = vmax.f32 %v903_v63, 0.0 }
 0x2da   : > { %v3576_v2 = vpack.c.bf16 %v969_v0, %v968_v58 }
 0x2db   : > { %v3578_v3 = vpack.c.bf16 %v967_v1, %v966_v62  ;;  %v2815_v4 = vpop.f32.mrb[24].mxu1 }
 0x2dc   : > { %v924_v5 = vadd.f32 %v2815_v4, %v3510_v43  ;;  %v915_v6 = vpop.f32.mrb[25].mxu1 }
 0x2dd   : > { %1461 = vmatmul.mubr.bf16.gmra.mrb[52].mxu0 %v3540_v59  ;;  %1654 = vmatmul.mubr.bf16.gmra.mrb[52].mxu1 %v3540_v59  ;;  %v916_v7 = vadd.f32 %v3510_v43, %v915_v6  ;;  %v2816_v8 = vpop.f32.mrb[26].mxu1 }
 0x2de   : > { %1470 = vmatprep.mubr.bf16.mxu0 %v3145_v16  ;;  %1663 = vmatprep.mubr.bf16.mxu1 %v3145_v16  ;;  %v972_v9 = vmax.f32 %v924_v5, 0.0  ;;  %v927_v10 = vadd.f32 %v2816_v8, %v3510_v43  ;;  %v918_v11 = vpop.f32.mrb[27].mxu1 }
 0x2df   : > { %v970_v12 = vmax.f32 %v916_v7, 0.0  ;;  %v919_v13 = vadd.f32 %v3510_v43, %v918_v11 }
 0x2e0   : > { %v973_v14 = vmax.f32 %v927_v10, 0.0 }
 0x2e1   : > { %v971_v15 = vmax.f32 %v919_v13, 0.0 }
 0x2e2   : > { %v3588_v17 = vpack.c.bf16 %v973_v14, %v972_v9 }
 0x2e3   : > { %v3590_v18 = vpack.c.bf16 %v971_v15, %v970_v12  ;;  %v2819_v19 = vpop.f32.mrb[28].mxu1 }
 0x2e4   : > { %v940_v20 = vadd.f32 %v2819_v19, %v3510_v43  ;;  %v931_v21 = vpop.f32.mrb[29].mxu1 }
 0x2e5   : > { %1471 = vmatmul.mubr.bf16.gmra.mrb[56].mxu0 %v3554_v28  ;;  %1664 = vmatmul.mubr.bf16.gmra.mrb[56].mxu1 %v3554_v28  ;;  %v932_v22 = vadd.f32 %v3510_v43, %v931_v21  ;;  %v2820_v23 = vpop.f32.mrb[30].mxu1 }
 0x2e6   : > { %1480 = vmatprep.mubr.bf16.mxu0 %v3145_v16  ;;  %1673 = vmatprep.mubr.bf16.mxu1 %v3145_v16  ;;  %v976_v24 = vmax.f32 %v940_v20, 0.0  ;;  %v943_v29 = vadd.f32 %v2820_v23, %v3510_v43  ;;  %v934_v30 = vpop.f32.mrb[31].mxu1 }
 0x2e7   : > { %v974_v31 = vmax.f32 %v932_v22, 0.0  ;;  %v935_v32 = vadd.f32 %v3510_v43, %v934_v30 }
 0x2e8   : > { %v977_v33 = vmax.f32 %v943_v29, 0.0 }
 0x2e9   : > { %v975_v34 = vmax.f32 %v935_v32, 0.0 }
 0x2ea   : > { %v3600_v35 = vpack.c.bf16 %v977_v33, %v976_v24 }
 0x2eb   : > { %v3602_v36 = vpack.c.bf16 %v975_v34, %v974_v31 }
 0x2ed   : > { %1481 = vmatmul.mubr.bf16.gmra.mrb[60].mxu0 %v3552_v27  ;;  %1674 = vmatmul.mubr.bf16.gmra.mrb[60].mxu1 %v3552_v27 }
 0x2ee   : > { %1490 = vmatprep.mubr.bf16.mxu0 %v3145_v16  ;;  %1683 = vmatprep.mubr.bf16.mxu1 %v3145_v16 }
 0x2f5   : > { %1491 = vmatmul.mubr.bf16.gmra.mrb[64].mxu0 %v3566_v49  ;;  %1684 = vmatmul.mubr.bf16.gmra.mrb[64].mxu1 %v3566_v49 }
 0x2f6   : > { %1500 = vmatprep.mubr.bf16.mxu0 %v3145_v16  ;;  %1693 = vmatprep.mubr.bf16.mxu1 %v3145_v16 }
 0x2fd   : > { %1501 = vmatmul.mubr.bf16.gmra.mrb[68].mxu0 %v3564_v48  ;;  %1694 = vmatmul.mubr.bf16.gmra.mrb[68].mxu1 %v3564_v48 }
 0x2fe   : > { %1510 = vmatprep.mubr.bf16.mxu0 %v3145_v16  ;;  %1703 = vmatprep.mubr.bf16.mxu1 %v3145_v16 }
 0x305   : > { %1511 = vmatmul.mubr.bf16.gmra.mrb[72].mxu0 %v3578_v3  ;;  %1704 = vmatmul.mubr.bf16.gmra.mrb[72].mxu1 %v3578_v3 }
 0x306   : > { %1520 = vmatprep.mubr.bf16.mxu0 %v3145_v16  ;;  %1713 = vmatprep.mubr.bf16.mxu1 %v3145_v16 }
 0x30d   : > { %1521 = vmatmul.mubr.bf16.gmra.mrb[76].mxu0 %v3576_v2  ;;  %1714 = vmatmul.mubr.bf16.gmra.mrb[76].mxu1 %v3576_v2 }
 0x30e   : > { %1530 = vmatprep.mubr.bf16.mxu0 %v3145_v16  ;;  %1723 = vmatprep.mubr.bf16.mxu1 %v3145_v16 }
 0x315   : > { %1531 = vmatmul.mubr.bf16.gmra.mrb[80].mxu0 %v3590_v18  ;;  %1724 = vmatmul.mubr.bf16.gmra.mrb[80].mxu1 %v3590_v18 }
 0x316   : > { %1540 = vmatprep.mubr.bf16.mxu0 %v3145_v16  ;;  %1733 = vmatprep.mubr.bf16.mxu1 %v3145_v16 }
 0x31d   : > { %1541 = vmatmul.mubr.bf16.gmra.mrb[84].mxu0 %v3588_v17  ;;  %1734 = vmatmul.mubr.bf16.gmra.mrb[84].mxu1 %v3588_v17 }
 0x31e   : > { %1550 = vmatprep.mubr.bf16.mxu0 %v3145_v16  ;;  %1743 = vmatprep.mubr.bf16.mxu1 %v3145_v16 }
 0x325   : > { %1551 = vmatmul.mubr.bf16.gmra.mrb[88].mxu0 %v3602_v36  ;;  %1744 = vmatmul.mubr.bf16.gmra.mrb[88].mxu1 %v3602_v36 }
 0x326   : > { %1560 = vmatprep.mubr.bf16.mxu0 %v3145_v16  ;;  %1753 = vmatprep.mubr.bf16.mxu1 %v3145_v16 }
 0x32d   : > { %1561 = vmatmul.mubr.bf16.gmra.mrb[92].mxu0 %v3600_v35  ;;  %1754 = vmatmul.mubr.bf16.gmra.mrb[92].mxu1 %v3600_v35 }
 0x32e   : > { %1796 = vmatprep.mubr.bf16.mxu0 %v3145_v16  ;;  %1989 = vmatprep.mubr.bf16.mxu1 %v3145_v16 }
 0x335   : > { %1797 = vmatmul.mubr.bf16.vlgmr.msra.gmra.mrb[96].mxu0 %v3518_v56  ;;  %1990 = vmatmul.mubr.bf16.vlgmr.msra.gmra.mrb[96].mxu1 %v3518_v56 }
 0x336   : > { %1806 = vmatprep.mubr.bf16.mxu0 %v3145_v16  ;;  %1999 = vmatprep.mubr.bf16.mxu1 %v3145_v16 }
 0x33d   : > { %1807 = vmatmul.mubr.bf16.gmra.mrb[100].mxu0 %v3516_v53  ;;  %2000 = vmatmul.mubr.bf16.gmra.mrb[100].mxu1 %v3516_v53 }
 0x33e   : > { %1816 = vmatprep.mubr.bf16.mxu0 %v3145_v16  ;;  %2009 = vmatprep.mubr.bf16.mxu1 %v3145_v16 }
 0x345   : > { %1817 = vmatmul.mubr.bf16.gmra.mrb[104].mxu0 %v3530_v26  ;;  %2010 = vmatmul.mubr.bf16.gmra.mrb[104].mxu1 %v3530_v26 }
 0x346   : > { %1826 = vmatprep.mubr.bf16.mxu0 %v3145_v16  ;;  %2019 = vmatprep.mubr.bf16.mxu1 %v3145_v16 }
 0x34d   : > { %1827 = vmatmul.mubr.bf16.gmra.mrb[108].mxu0 %v3528_v25  ;;  %2020 = vmatmul.mubr.bf16.gmra.mrb[108].mxu1 %v3528_v25 }
 0x34e   : > { %1836 = vmatprep.mubr.bf16.mxu0 %v3145_v16  ;;  %2029 = vmatprep.mubr.bf16.mxu1 %v3145_v16 }
 0x355   : > { %1837 = vmatmul.mubr.bf16.gmra.mrb[112].mxu0 %v3542_v60  ;;  %2030 = vmatmul.mubr.bf16.gmra.mrb[112].mxu1 %v3542_v60 }
 0x356   : > { %1846 = vmatprep.mubr.bf16.mxu0 %v3145_v16  ;;  %2039 = vmatprep.mubr.bf16.mxu1 %v3145_v16 }
 0x35d   : > { %1847 = vmatmul.mubr.bf16.gmra.mrb[116].mxu0 %v3540_v59  ;;  %2040 = vmatmul.mubr.bf16.gmra.mrb[116].mxu1 %v3540_v59 }
 0x35e   : > { %1856 = vmatprep.mubr.bf16.mxu0 %v3145_v16  ;;  %2049 = vmatprep.mubr.bf16.mxu1 %v3145_v16 }
 0x365   : > { %1857 = vmatmul.mubr.bf16.gmra.mrb[120].mxu0 %v3554_v28  ;;  %2050 = vmatmul.mubr.bf16.gmra.mrb[120].mxu1 %v3554_v28 }
 0x366   : > { %1866 = vmatprep.mubr.bf16.mxu0 %v3145_v16  ;;  %2059 = vmatprep.mubr.bf16.mxu1 %v3145_v16 }
 0x36d   : > { %1867 = vmatmul.mubr.bf16.gmra.mrb[124].mxu0 %v3552_v27  ;;  %2060 = vmatmul.mubr.bf16.gmra.mrb[124].mxu1 %v3552_v27 }
 0x36e   : > { %1876 = vmatprep.mubr.bf16.mxu0 %v3145_v16  ;;  %2069 = vmatprep.mubr.bf16.mxu1 %v3145_v16 }
 0x375   : > { %1877 = vmatmul.mubr.bf16.gmra.mrb[128].mxu0 %v3566_v49  ;;  %2070 = vmatmul.mubr.bf16.gmra.mrb[128].mxu1 %v3566_v49 }
 0x376   : > { %1886 = vmatprep.mubr.bf16.mxu0 %v3145_v16  ;;  %2079 = vmatprep.mubr.bf16.mxu1 %v3145_v16 }
 0x37d   : > { %1887 = vmatmul.mubr.bf16.gmra.mrb[132].mxu0 %v3564_v48  ;;  %2080 = vmatmul.mubr.bf16.gmra.mrb[132].mxu1 %v3564_v48 }
 0x37e   : > { %1896 = vmatprep.mubr.bf16.mxu0 %v3145_v16  ;;  %2089 = vmatprep.mubr.bf16.mxu1 %v3145_v16 }
 0x385   : > { %1897 = vmatmul.mubr.bf16.gmra.mrb[136].mxu0 %v3578_v3  ;;  %2090 = vmatmul.mubr.bf16.gmra.mrb[136].mxu1 %v3578_v3 }
 0x386   : > { %1906 = vmatprep.mubr.bf16.mxu0 %v3145_v16  ;;  %2099 = vmatprep.mubr.bf16.mxu1 %v3145_v16 }
 0x388   : > { %v1412_v43 = vpop.f32.mrb[32].mxu0  ;;  %v1605_v53 = vpop.f32.mrb[32].mxu1 }
 0x389   : > { %v1414_v56 = vpop.f32.mrb[33].mxu0  ;;  %v1607_v25 = vpop.f32.mrb[33].mxu1 }
 0x38a   : > { %v1416_v26 = vpop.f32.mrb[34].mxu0  ;;  %v1609_v59 = vpop.f32.mrb[34].mxu1 }
 0x38b   : > { %v2150_v60 = vmax.f32 %v1412_v43, %v1416_v26  ;;  %v2212_v27 = vmax.f32 %v1605_v53, %v1609_v59  ;;  %v1418_v28 = vpop.f32.mrb[35].mxu0  ;;  %v1611_v37 = vpop.f32.mrb[35].mxu1 }
 0x38c   : > { %v2181_v38 = vmax.f32 %v1414_v56, %v1418_v28  ;;  %v2243_v39 = vmax.f32 %v1607_v25, %v1611_v37 }
 0x38d   : > { %1907 = vmatmul.mubr.bf16.gmra.mrb[140].mxu0 %v3576_v2  ;;  %2100 = vmatmul.mubr.bf16.gmra.mrb[140].mxu1 %v3576_v2 }
 0x38e   : > { %1916 = vmatprep.mubr.bf16.mxu0 %v3145_v16  ;;  %2109 = vmatprep.mubr.bf16.mxu1 %v3145_v16 }
 0x390   : > { %v1422_v40 = vpop.f32.mrb[36].mxu0  ;;  %v1615_v41 = vpop.f32.mrb[36].mxu1 }
 0x391   : > { %v2151_v42 = vmax.f32 %v2150_v60, %v1422_v40  ;;  %v2213_v44 = vmax.f32 %v2212_v27, %v1615_v41  ;;  %v1424_v45 = vpop.f32.mrb[37].mxu0  ;;  %v1617_v46 = vpop.f32.mrb[37].mxu1 }
 0x392   : > { %v2182_v47 = vmax.f32 %v2181_v38, %v1424_v45  ;;  %v2244_v48 = vmax.f32 %v2243_v39, %v1617_v46  ;;  %v1426_v49 = vpop.f32.mrb[38].mxu0  ;;  %v1619_v51 = vpop.f32.mrb[38].mxu1 }
 0x393   : > { %v2152_v52 = vmax.f32 %v2151_v42, %v1426_v49  ;;  %v2214_v54 = vmax.f32 %v2213_v44, %v1619_v51  ;;  %v1428_v55 = vpop.f32.mrb[39].mxu0  ;;  %v1621_v57 = vpop.f32.mrb[39].mxu1 }
 0x394   : > { %v2183_v58 = vmax.f32 %v2182_v47, %v1428_v55  ;;  %v2245_v61 = vmax.f32 %v2244_v48, %v1621_v57 }
 0x395   : > { %1917 = vmatmul.mubr.bf16.gmra.mrb[144].mxu0 %v3590_v18  ;;  %2110 = vmatmul.mubr.bf16.gmra.mrb[144].mxu1 %v3590_v18 }
 0x396   : > { %1926 = vmatprep.mubr.bf16.mxu0 %v3145_v16  ;;  %2119 = vmatprep.mubr.bf16.mxu1 %v3145_v16 }
 0x398   : > { %v1432_v50 = vpop.f32.mrb[40].mxu0  ;;  %v1625_v62 = vpop.f32.mrb[40].mxu1 }
 0x399   : > { %v2153_v63 = vmax.f32 %v2152_v52, %v1432_v50  ;;  %v2215_v0 = vmax.f32 %v2214_v54, %v1625_v62  ;;  %v1434_v1 = vpop.f32.mrb[41].mxu0  ;;  %v1627_v2 = vpop.f32.mrb[41].mxu1 }
 0x39a   : > { %v2184_v3 = vmax.f32 %v2183_v58, %v1434_v1  ;;  %v2246_v4 = vmax.f32 %v2245_v61, %v1627_v2  ;;  %v1436_v5 = vpop.f32.mrb[42].mxu0  ;;  %v1629_v6 = vpop.f32.mrb[42].mxu1 }
 0x39b   : > { %v2154_v7 = vmax.f32 %v2153_v63, %v1436_v5  ;;  %v2216_v8 = vmax.f32 %v2215_v0, %v1629_v6  ;;  %v1438_v9 = vpop.f32.mrb[43].mxu0  ;;  %v1631_v10 = vpop.f32.mrb[43].mxu1 }
 0x39c   : > { %v2185_v11 = vmax.f32 %v2184_v3, %v1438_v9  ;;  %v2247_v12 = vmax.f32 %v2246_v4, %v1631_v10 }
 0x39d   : > { %1927 = vmatmul.mubr.bf16.gmra.mrb[148].mxu0 %v3588_v17  ;;  %2120 = vmatmul.mubr.bf16.gmra.mrb[148].mxu1 %v3588_v17 }
 0x39e   : > { %1936 = vmatprep.mubr.bf16.mxu0 %v3145_v16  ;;  %2129 = vmatprep.mubr.bf16.mxu1 %v3145_v16 }
 0x3a0   : > { %v1442_v13 = vpop.f32.mrb[44].mxu0  ;;  %v1635_v14 = vpop.f32.mrb[44].mxu1 }
 0x3a1   : > { %v2155_v15 = vmax.f32 %v2154_v7, %v1442_v13  ;;  %v2217_v18 = vmax.f32 %v2216_v8, %v1635_v14  ;;  %v1444_v19 = vpop.f32.mrb[45].mxu0  ;;  %v1637_v20 = vpop.f32.mrb[45].mxu1 }
 0x3a2   : > { %v2186_v21 = vmax.f32 %v2185_v11, %v1444_v19  ;;  %v2248_v22 = vmax.f32 %v2247_v12, %v1637_v20  ;;  %v1446_v23 = vpop.f32.mrb[46].mxu0  ;;  %v1639_v24 = vpop.f32.mrb[46].mxu1 }
 0x3a3   : > { %v2156_v29 = vmax.f32 %v2155_v15, %v1446_v23  ;;  %v2218_v30 = vmax.f32 %v2217_v18, %v1639_v24  ;;  %v1448_v31 = vpop.f32.mrb[47].mxu0  ;;  %v1641_v32 = vpop.f32.mrb[47].mxu1 }
 0x3a4   : > { %v2187_v33 = vmax.f32 %v2186_v21, %v1448_v31  ;;  %v2249_v17 = vmax.f32 %v2248_v22, %v1641_v32 }
 0x3a5   : > { %1937 = vmatmul.mubr.bf16.gmra.mrb[152].mxu0 %v3602_v36  ;;  %2130 = vmatmul.mubr.bf16.gmra.mrb[152].mxu1 %v3602_v36 }
 0x3a6   : > { %1946 = vmatprep.mubr.bf16.mxu0 %v3145_v16  ;;  %2139 = vmatprep.mubr.bf16.mxu1 %v3145_v16 }
 0x3a8   : > { %v1452_v34 = vpop.f32.mrb[48].mxu0  ;;  %v1645_v43 = vpop.f32.mrb[48].mxu1 }
 0x3a9   : > { %v2157_v53 = vmax.f32 %v2156_v29, %v1452_v34  ;;  %v2219_v56 = vmax.f32 %v2218_v30, %v1645_v43  ;;  %v1454_v25 = vpop.f32.mrb[49].mxu0  ;;  %v1647_v26 = vpop.f32.mrb[49].mxu1 }
 0x3aa   : > { %v2188_v59 = vmax.f32 %v2187_v33, %v1454_v25  ;;  %v2250_v60 = vmax.f32 %v2249_v17, %v1647_v26  ;;  %v1456_v27 = vpop.f32.mrb[50].mxu0  ;;  %v1649_v28 = vpop.f32.mrb[50].mxu1 }
 0x3ab   : > { %v2158_v37 = vmax.f32 %v2157_v53, %v1456_v27  ;;  %v2220_v38 = vmax.f32 %v2219_v56, %v1649_v28  ;;  %v1458_v39 = vpop.f32.mrb[51].mxu0  ;;  %v1651_v40 = vpop.f32.mrb[51].mxu1 }
 0x3ac   : > { %v2189_v41 = vmax.f32 %v2188_v59, %v1458_v39  ;;  %v2251_v36 = vmax.f32 %v2250_v60, %v1651_v40 }
 0x3ad   : > { %1947 = vmatmul.mubr.bf16.gmra.mrb[156].mxu0 %v3600_v35  ;;  %2140 = vmatmul.mubr.bf16.gmra.mrb[156].mxu1 %v3600_v35 }
 0x3b0   : > { %v1462_v16 = vpop.f32.mrb[52].mxu0  ;;  %v1655_v42 = vpop.f32.mrb[52].mxu1 }
 0x3b1   : > { %v2159_v44 = vmax.f32 %v2158_v37, %v1462_v16  ;;  %v2221_v45 = vmax.f32 %v2220_v38, %v1655_v42  ;;  %v1464_v46 = vpop.f32.mrb[53].mxu0  ;;  %v1657_v47 = vpop.f32.mrb[53].mxu1 }
 0x3b2   : > { %v2190_v48 = vmax.f32 %v2189_v41, %v1464_v46  ;;  %v2252_v49 = vmax.f32 %v2251_v36, %v1657_v47  ;;  %v1466_v51 = vpop.f32.mrb[54].mxu0  ;;  %v1659_v52 = vpop.f32.mrb[54].mxu1 }
 0x3b3   : > { %v2160_v54 = vmax.f32 %v2159_v44, %v1466_v51  ;;  %v2222_v55 = vmax.f32 %v2221_v45, %v1659_v52  ;;  %v1468_v57 = vpop.f32.mrb[55].mxu0  ;;  %v1661_v58 = vpop.f32.mrb[55].mxu1 }
 0x3b4   : > { %v2191_v61 = vmax.f32 %v2190_v48, %v1468_v57  ;;  %v2253_v50 = vmax.f32 %v2252_v49, %v1661_v58 }
 0x3b8   : > { %v1472_v62 = vpop.f32.mrb[56].mxu0  ;;  %v1665_v63 = vpop.f32.mrb[56].mxu1 }
 0x3b9   : > { %v2161_v0 = vmax.f32 %v2160_v54, %v1472_v62  ;;  %v2223_v35 = vmax.f32 %v2222_v55, %v1665_v63  ;;  %v1474_v1 = vpop.f32.mrb[57].mxu0  ;;  %v1667_v2 = vpop.f32.mrb[57].mxu1 }
 0x3ba   : > { %v2192_v3 = vmax.f32 %v2191_v61, %v1474_v1  ;;  %v2254_v4 = vmax.f32 %v2253_v50, %v1667_v2  ;;  %v1476_v5 = vpop.f32.mrb[58].mxu0  ;;  %v1669_v6 = vpop.f32.mrb[58].mxu1 }
 0x3bb   : > { %v2162_v7 = vmax.f32 %v2161_v0, %v1476_v5  ;;  %v2224_v8 = vmax.f32 %v2223_v35, %v1669_v6  ;;  %v1478_v9 = vpop.f32.mrb[59].mxu0  ;;  %v1671_v10 = vpop.f32.mrb[59].mxu1 }
 0x3bc   : > { %v2193_v11 = vmax.f32 %v2192_v3, %v1478_v9  ;;  %v2255_v12 = vmax.f32 %v2254_v4, %v1671_v10 }
 0x3c0   : > { %v1482_v13 = vpop.f32.mrb[60].mxu0  ;;  %v1675_v14 = vpop.f32.mrb[60].mxu1 }
 0x3c1   : > { %v2163_v15 = vmax.f32 %v2162_v7, %v1482_v13  ;;  %v2225_v18 = vmax.f32 %v2224_v8, %v1675_v14  ;;  %v1484_v19 = vpop.f32.mrb[61].mxu0  ;;  %v1677_v20 = vpop.f32.mrb[61].mxu1 }
 0x3c2   : > { %v2194_v21 = vmax.f32 %v2193_v11, %v1484_v19  ;;  %v2256_v22 = vmax.f32 %v2255_v12, %v1677_v20  ;;  %v1486_v23 = vpop.f32.mrb[62].mxu0  ;;  %v1679_v24 = vpop.f32.mrb[62].mxu1 }
 0x3c3   : > { %v2164_v29 = vmax.f32 %v2163_v15, %v1486_v23  ;;  %v2226_v30 = vmax.f32 %v2225_v18, %v1679_v24  ;;  %v1488_v31 = vpop.f32.mrb[63].mxu0  ;;  %v1681_v32 = vpop.f32.mrb[63].mxu1 }
 0x3c4   : > { %v2195_v33 = vmax.f32 %v2194_v21, %v1488_v31  ;;  %v2257_v17 = vmax.f32 %v2256_v22, %v1681_v32 }
 0x3c8   : > { %v1492_v34 = vpop.f32.mrb[64].mxu0  ;;  %v1685_v43 = vpop.f32.mrb[64].mxu1 }
 0x3c9   : > { %v2165_v53 = vmax.f32 %v2164_v29, %v1492_v34  ;;  %v2227_v56 = vmax.f32 %v2226_v30, %v1685_v43  ;;  %v1494_v25 = vpop.f32.mrb[65].mxu0  ;;  %v1687_v26 = vpop.f32.mrb[65].mxu1 }
 0x3ca   : > { %v2196_v59 = vmax.f32 %v2195_v33, %v1494_v25  ;;  %v2258_v60 = vmax.f32 %v2257_v17, %v1687_v26  ;;  %v1496_v27 = vpop.f32.mrb[66].mxu0  ;;  %v1689_v28 = vpop.f32.mrb[66].mxu1 }
 0x3cb   : > { %v2166_v37 = vmax.f32 %v2165_v53, %v1496_v27  ;;  %v2228_v38 = vmax.f32 %v2227_v56, %v1689_v28  ;;  %v1498_v39 = vpop.f32.mrb[67].mxu0  ;;  %v1691_v40 = vpop.f32.mrb[67].mxu1 }
 0x3cc   : > { %v2197_v41 = vmax.f32 %v2196_v59, %v1498_v39  ;;  %v2259_v36 = vmax.f32 %v2258_v60, %v1691_v40 }
 0x3d0   : > { %v1502_v16 = vpop.f32.mrb[68].mxu0  ;;  %v1695_v42 = vpop.f32.mrb[68].mxu1 }
 0x3d1   : > { %v2167_v44 = vmax.f32 %v2166_v37, %v1502_v16  ;;  %v2229_v45 = vmax.f32 %v2228_v38, %v1695_v42  ;;  %v1504_v46 = vpop.f32.mrb[69].mxu0  ;;  %v1697_v47 = vpop.f32.mrb[69].mxu1 }
 0x3d2   : > { %v2198_v48 = vmax.f32 %v2197_v41, %v1504_v46  ;;  %v2260_v49 = vmax.f32 %v2259_v36, %v1697_v47  ;;  %v1506_v51 = vpop.f32.mrb[70].mxu0  ;;  %v1699_v52 = vpop.f32.mrb[70].mxu1 }
 0x3d3   : > { %v2168_v54 = vmax.f32 %v2167_v44, %v1506_v51  ;;  %v2230_v55 = vmax.f32 %v2229_v45, %v1699_v52  ;;  %v1508_v57 = vpop.f32.mrb[71].mxu0  ;;  %v1701_v58 = vpop.f32.mrb[71].mxu1 }
 0x3d4   : > { %v2199_v61 = vmax.f32 %v2198_v48, %v1508_v57  ;;  %v2261_v50 = vmax.f32 %v2260_v49, %v1701_v58 }
 0x3d8   : > { %v1512_v62 = vpop.f32.mrb[72].mxu0  ;;  %v1705_v63 = vpop.f32.mrb[72].mxu1 }
 0x3d9   : > { %v2169_v0 = vmax.f32 %v2168_v54, %v1512_v62  ;;  %v2231_v35 = vmax.f32 %v2230_v55, %v1705_v63  ;;  %v1514_v1 = vpop.f32.mrb[73].mxu0  ;;  %v1707_v2 = vpop.f32.mrb[73].mxu1 }
 0x3da   : > { %v2200_v3 = vmax.f32 %v2199_v61, %v1514_v1  ;;  %v2262_v4 = vmax.f32 %v2261_v50, %v1707_v2  ;;  %v1516_v5 = vpop.f32.mrb[74].mxu0  ;;  %v1709_v6 = vpop.f32.mrb[74].mxu1 }
 0x3db   : > { %v2170_v7 = vmax.f32 %v2169_v0, %v1516_v5  ;;  %v2232_v8 = vmax.f32 %v2231_v35, %v1709_v6  ;;  %v1518_v9 = vpop.f32.mrb[75].mxu0  ;;  %v1711_v10 = vpop.f32.mrb[75].mxu1 }
 0x3dc   : > { %v2201_v11 = vmax.f32 %v2200_v3, %v1518_v9  ;;  %v2263_v12 = vmax.f32 %v2262_v4, %v1711_v10 }
 0x3e0   : > { %v1522_v13 = vpop.f32.mrb[76].mxu0  ;;  %v1715_v14 = vpop.f32.mrb[76].mxu1 }
 0x3e1   : > { %v2171_v15 = vmax.f32 %v2170_v7, %v1522_v13  ;;  %v2233_v18 = vmax.f32 %v2232_v8, %v1715_v14  ;;  %v1524_v19 = vpop.f32.mrb[77].mxu0  ;;  %v1717_v20 = vpop.f32.mrb[77].mxu1 }
 0x3e2   : > { %v2202_v21 = vmax.f32 %v2201_v11, %v1524_v19  ;;  %v2264_v22 = vmax.f32 %v2263_v12, %v1717_v20  ;;  %v1526_v23 = vpop.f32.mrb[78].mxu0  ;;  %v1719_v24 = vpop.f32.mrb[78].mxu1 }
 0x3e3   : > { %v2172_v29 = vmax.f32 %v2171_v15, %v1526_v23  ;;  %v2234_v30 = vmax.f32 %v2233_v18, %v1719_v24  ;;  %v1528_v31 = vpop.f32.mrb[79].mxu0  ;;  %v1721_v32 = vpop.f32.mrb[79].mxu1 }
 0x3e4   : > { %v2203_v33 = vmax.f32 %v2202_v21, %v1528_v31  ;;  %v2265_v17 = vmax.f32 %v2264_v22, %v1721_v32 }
 0x3e8   : > { %v1532_v34 = vpop.f32.mrb[80].mxu0  ;;  %v1725_v43 = vpop.f32.mrb[80].mxu1 }
 0x3e9   : > { %v2173_v53 = vmax.f32 %v2172_v29, %v1532_v34  ;;  %v2235_v56 = vmax.f32 %v2234_v30, %v1725_v43  ;;  %v1534_v25 = vpop.f32.mrb[81].mxu0  ;;  %v1727_v26 = vpop.f32.mrb[81].mxu1 }
 0x3ea   : > { %v2204_v59 = vmax.f32 %v2203_v33, %v1534_v25  ;;  %v2266_v60 = vmax.f32 %v2265_v17, %v1727_v26  ;;  %v1536_v27 = vpop.f32.mrb[82].mxu0  ;;  %v1729_v28 = vpop.f32.mrb[82].mxu1 }
 0x3eb   : > { %v2174_v37 = vmax.f32 %v2173_v53, %v1536_v27  ;;  %v2236_v38 = vmax.f32 %v2235_v56, %v1729_v28  ;;  %v1538_v39 = vpop.f32.mrb[83].mxu0  ;;  %v1731_v40 = vpop.f32.mrb[83].mxu1 }
 0x3ec   : > { %v2205_v41 = vmax.f32 %v2204_v59, %v1538_v39  ;;  %v2267_v36 = vmax.f32 %v2266_v60, %v1731_v40 }
 0x3f0   : > { %v1542_v16 = vpop.f32.mrb[84].mxu0  ;;  %v1735_v42 = vpop.f32.mrb[84].mxu1 }
 0x3f1   : > { %v2175_v44 = vmax.f32 %v2174_v37, %v1542_v16  ;;  %v2237_v45 = vmax.f32 %v2236_v38, %v1735_v42  ;;  %v1544_v46 = vpop.f32.mrb[85].mxu0  ;;  %v1737_v47 = vpop.f32.mrb[85].mxu1 }
 0x3f2   : > { %v2206_v48 = vmax.f32 %v2205_v41, %v1544_v46  ;;  %v2268_v49 = vmax.f32 %v2267_v36, %v1737_v47  ;;  %v1546_v51 = vpop.f32.mrb[86].mxu0  ;;  %v1739_v52 = vpop.f32.mrb[86].mxu1 }
 0x3f3   : > { %v2176_v54 = vmax.f32 %v2175_v44, %v1546_v51  ;;  %v2238_v55 = vmax.f32 %v2237_v45, %v1739_v52  ;;  %v1548_v57 = vpop.f32.mrb[87].mxu0  ;;  %v1741_v58 = vpop.f32.mrb[87].mxu1 }
 0x3f4   : > { %v2207_v61 = vmax.f32 %v2206_v48, %v1548_v57  ;;  %v2269_v50 = vmax.f32 %v2268_v49, %v1741_v58 }
 0x3f8   : > { %v1552_v62 = vpop.f32.mrb[88].mxu0  ;;  %v1745_v63 = vpop.f32.mrb[88].mxu1 }
 0x3f9   : > { %v2177_v0 = vmax.f32 %v2176_v54, %v1552_v62  ;;  %v2239_v35 = vmax.f32 %v2238_v55, %v1745_v63  ;;  %v1554_v1 = vpop.f32.mrb[89].mxu0  ;;  %v1747_v2 = vpop.f32.mrb[89].mxu1 }
 0x3fa   : > { %v2208_v3 = vmax.f32 %v2207_v61, %v1554_v1  ;;  %v2270_v4 = vmax.f32 %v2269_v50, %v1747_v2  ;;  %v1556_v5 = vpop.f32.mrb[90].mxu0  ;;  %v1749_v6 = vpop.f32.mrb[90].mxu1 }
 0x3fb   : > { %v2178_v7 = vmax.f32 %v2177_v0, %v1556_v5  ;;  %v2240_v8 = vmax.f32 %v2239_v35, %v1749_v6  ;;  %v1558_v9 = vpop.f32.mrb[91].mxu0  ;;  %v1751_v10 = vpop.f32.mrb[91].mxu1 }
 0x3fc   : > { %v2209_v11 = vmax.f32 %v2208_v3, %v1558_v9  ;;  %v2271_v12 = vmax.f32 %v2270_v4, %v1751_v10 }
 0x400   : > { %v1562_v13 = vpop.f32.mrb[92].mxu0  ;;  %v1755_v14 = vpop.f32.mrb[92].mxu1 }
 0x401   : > { %v2179_v15 = vmax.f32 %v2178_v7, %v1562_v13  ;;  %v2241_v18 = vmax.f32 %v2240_v8, %v1755_v14  ;;  %v1564_v19 = vpop.f32.mrb[93].mxu0  ;;  %v1757_v20 = vpop.f32.mrb[93].mxu1 }
 0x402   : > { %v2210_v21 = vmax.f32 %v2209_v11, %v1564_v19  ;;  %v2272_v22 = vmax.f32 %v2271_v12, %v1757_v20  ;;  %v1566_v23 = vpop.f32.mrb[94].mxu0  ;;  %v1759_v24 = vpop.f32.mrb[94].mxu1 }
 0x403   : > { %v2180_v29 = vmax.f32 %v2179_v15, %v1566_v23  ;;  %v2242_v30 = vmax.f32 %v2241_v18, %v1759_v24  ;;  %v1568_v31 = vpop.f32.mrb[95].mxu0  ;;  %v1761_v32 = vpop.f32.mrb[95].mxu1 }
 0x404   : > { %v2211_v33 = vmax.f32 %v2210_v21, %v1568_v31  ;;  %v2273_v17 = vmax.f32 %v2272_v22, %v1761_v32 }
 0x405   : > { %2402 = vst [vmem:[%s3703_s14] sm:$0xff] %v2180_v29  ;;  %2404 = vst [vmem:[%s3703_s14 + $0x10] sm:$0xff] %v2242_v30 }
 0x406   : > { %2403 = vst [vmem:[%s3703_s14 + $0x8] sm:$0xff] %v2211_v33  ;;  %2405 = vst [vmem:[%s3703_s14 + $0x18] sm:$0xff] %v2273_v17 }
 0x408   : > { %v1798_v34 = vpop.f32.mrb[96].mxu0  ;;  %v1991_v43 = vpop.f32.mrb[96].mxu1 }
 0x409   : > { %v1800_v53 = vpop.f32.mrb[97].mxu0  ;;  %v1993_v56 = vpop.f32.mrb[97].mxu1 }
 0x40a   : > { %v1802_v25 = vpop.f32.mrb[98].mxu0  ;;  %v1995_v26 = vpop.f32.mrb[98].mxu1 }
 0x40b   : > { %v2274_v59 = vmax.f32 %v1798_v34, %v1802_v25  ;;  %v2336_v60 = vmax.f32 %v1991_v43, %v1995_v26  ;;  %v1804_v27 = vpop.f32.mrb[99].mxu0  ;;  %v1997_v28 = vpop.f32.mrb[99].mxu1 }
 0x40c   : > { %v2305_v37 = vmax.f32 %v1800_v53, %v1804_v27  ;;  %v2367_v38 = vmax.f32 %v1993_v56, %v1997_v28 }
 0x410   : > { %v1808_v39 = vpop.f32.mrb[100].mxu0  ;;  %v2001_v40 = vpop.f32.mrb[100].mxu1 }
 0x411   : > { %v2275_v41 = vmax.f32 %v2274_v59, %v1808_v39  ;;  %v2337_v36 = vmax.f32 %v2336_v60, %v2001_v40  ;;  %v1810_v16 = vpop.f32.mrb[101].mxu0  ;;  %v2003_v42 = vpop.f32.mrb[101].mxu1 }
 0x412   : > { %v2306_v44 = vmax.f32 %v2305_v37, %v1810_v16  ;;  %v2368_v45 = vmax.f32 %v2367_v38, %v2003_v42  ;;  %v1812_v46 = vpop.f32.mrb[102].mxu0  ;;  %v2005_v47 = vpop.f32.mrb[102].mxu1 }
 0x413   : > { %v2276_v48 = vmax.f32 %v2275_v41, %v1812_v46  ;;  %v2338_v49 = vmax.f32 %v2337_v36, %v2005_v47  ;;  %v1814_v51 = vpop.f32.mrb[103].mxu0  ;;  %v2007_v52 = vpop.f32.mrb[103].mxu1 }
 0x414   : > { %v2307_v54 = vmax.f32 %v2306_v44, %v1814_v51  ;;  %v2369_v55 = vmax.f32 %v2368_v45, %v2007_v52 }
 0x418   : > { %v1818_v57 = vpop.f32.mrb[104].mxu0  ;;  %v2011_v58 = vpop.f32.mrb[104].mxu1 }
 0x419   : > { %v2277_v61 = vmax.f32 %v2276_v48, %v1818_v57  ;;  %v2339_v50 = vmax.f32 %v2338_v49, %v2011_v58  ;;  %v1820_v62 = vpop.f32.mrb[105].mxu0  ;;  %v2013_v63 = vpop.f32.mrb[105].mxu1 }
 0x41a   : > { %v2308_v0 = vmax.f32 %v2307_v54, %v1820_v62  ;;  %v2370_v35 = vmax.f32 %v2369_v55, %v2013_v63  ;;  %v1822_v1 = vpop.f32.mrb[106].mxu0  ;;  %v2015_v2 = vpop.f32.mrb[106].mxu1 }
 0x41b   : > { %v2278_v3 = vmax.f32 %v2277_v61, %v1822_v1  ;;  %v2340_v4 = vmax.f32 %v2339_v50, %v2015_v2  ;;  %v1824_v5 = vpop.f32.mrb[107].mxu0  ;;  %v2017_v6 = vpop.f32.mrb[107].mxu1 }
 0x41c   : > { %v2309_v7 = vmax.f32 %v2308_v0, %v1824_v5  ;;  %v2371_v8 = vmax.f32 %v2370_v35, %v2017_v6 }
 0x420   : > { %v1828_v9 = vpop.f32.mrb[108].mxu0  ;;  %v2021_v10 = vpop.f32.mrb[108].mxu1 }
 0x421   : > { %v2279_v11 = vmax.f32 %v2278_v3, %v1828_v9  ;;  %v2341_v12 = vmax.f32 %v2340_v4, %v2021_v10  ;;  %v1830_v13 = vpop.f32.mrb[109].mxu0  ;;  %v2023_v14 = vpop.f32.mrb[109].mxu1 }
 0x422   : > { %v2310_v15 = vmax.f32 %v2309_v7, %v1830_v13  ;;  %v2372_v18 = vmax.f32 %v2371_v8, %v2023_v14  ;;  %v1832_v19 = vpop.f32.mrb[110].mxu0  ;;  %v2025_v20 = vpop.f32.mrb[110].mxu1 }
 0x423   : > { %v2280_v21 = vmax.f32 %v2279_v11, %v1832_v19  ;;  %v2342_v22 = vmax.f32 %v2341_v12, %v2025_v20  ;;  %v1834_v23 = vpop.f32.mrb[111].mxu0  ;;  %v2027_v24 = vpop.f32.mrb[111].mxu1 }
 0x424   : > { %v2311_v29 = vmax.f32 %v2310_v15, %v1834_v23  ;;  %v2373_v30 = vmax.f32 %v2372_v18, %v2027_v24 }
 0x428   : > { %v1838_v31 = vpop.f32.mrb[112].mxu0  ;;  %v2031_v32 = vpop.f32.mrb[112].mxu1 }
 0x429   : > { %v2281_v33 = vmax.f32 %v2280_v21, %v1838_v31  ;;  %v2343_v17 = vmax.f32 %v2342_v22, %v2031_v32  ;;  %v1840_v34 = vpop.f32.mrb[113].mxu0  ;;  %v2033_v43 = vpop.f32.mrb[113].mxu1 }
 0x42a   : > { %v2312_v53 = vmax.f32 %v2311_v29, %v1840_v34  ;;  %v2374_v56 = vmax.f32 %v2373_v30, %v2033_v43  ;;  %v1842_v25 = vpop.f32.mrb[114].mxu0  ;;  %v2035_v26 = vpop.f32.mrb[114].mxu1 }
 0x42b   : > { %v2282_v59 = vmax.f32 %v2281_v33, %v1842_v25  ;;  %v2344_v60 = vmax.f32 %v2343_v17, %v2035_v26  ;;  %v1844_v27 = vpop.f32.mrb[115].mxu0  ;;  %v2037_v28 = vpop.f32.mrb[115].mxu1 }
 0x42c   : > { %v2313_v37 = vmax.f32 %v2312_v53, %v1844_v27  ;;  %v2375_v38 = vmax.f32 %v2374_v56, %v2037_v28 }
 0x430   : > { %v1848_v39 = vpop.f32.mrb[116].mxu0  ;;  %v2041_v40 = vpop.f32.mrb[116].mxu1 }
 0x431   : > { %v2283_v41 = vmax.f32 %v2282_v59, %v1848_v39  ;;  %v2345_v36 = vmax.f32 %v2344_v60, %v2041_v40  ;;  %v1850_v16 = vpop.f32.mrb[117].mxu0  ;;  %v2043_v42 = vpop.f32.mrb[117].mxu1 }
 0x432   : > { %v2314_v44 = vmax.f32 %v2313_v37, %v1850_v16  ;;  %v2376_v45 = vmax.f32 %v2375_v38, %v2043_v42  ;;  %v1852_v46 = vpop.f32.mrb[118].mxu0  ;;  %v2045_v47 = vpop.f32.mrb[118].mxu1 }
 0x433   : > { %v2284_v48 = vmax.f32 %v2283_v41, %v1852_v46  ;;  %v2346_v49 = vmax.f32 %v2345_v36, %v2045_v47  ;;  %v1854_v51 = vpop.f32.mrb[119].mxu0  ;;  %v2047_v52 = vpop.f32.mrb[119].mxu1 }
 0x434   : > { %v2315_v54 = vmax.f32 %v2314_v44, %v1854_v51  ;;  %v2377_v55 = vmax.f32 %v2376_v45, %v2047_v52 }
 0x438   : > { %v1858_v57 = vpop.f32.mrb[120].mxu0  ;;  %v2051_v58 = vpop.f32.mrb[120].mxu1 }
 0x439   : > { %v2285_v61 = vmax.f32 %v2284_v48, %v1858_v57  ;;  %v2347_v50 = vmax.f32 %v2346_v49, %v2051_v58  ;;  %v1860_v62 = vpop.f32.mrb[121].mxu0  ;;  %v2053_v63 = vpop.f32.mrb[121].mxu1 }
 0x43a   : > { %v2316_v0 = vmax.f32 %v2315_v54, %v1860_v62  ;;  %v2378_v35 = vmax.f32 %v2377_v55, %v2053_v63  ;;  %v1862_v1 = vpop.f32.mrb[122].mxu0  ;;  %v2055_v2 = vpop.f32.mrb[122].mxu1 }
 0x43b   : > { %v2286_v3 = vmax.f32 %v2285_v61, %v1862_v1  ;;  %v2348_v4 = vmax.f32 %v2347_v50, %v2055_v2  ;;  %v1864_v5 = vpop.f32.mrb[123].mxu0  ;;  %v2057_v6 = vpop.f32.mrb[123].mxu1 }
 0x43c   : > { %v2317_v7 = vmax.f32 %v2316_v0, %v1864_v5  ;;  %v2379_v8 = vmax.f32 %v2378_v35, %v2057_v6 }
 0x440   : > { %v1868_v9 = vpop.f32.mrb[124].mxu0  ;;  %v2061_v10 = vpop.f32.mrb[124].mxu1 }
 0x441   : > { %v2287_v11 = vmax.f32 %v2286_v3, %v1868_v9  ;;  %v2349_v12 = vmax.f32 %v2348_v4, %v2061_v10  ;;  %v1870_v13 = vpop.f32.mrb[125].mxu0  ;;  %v2063_v14 = vpop.f32.mrb[125].mxu1 }
 0x442   : > { %v2318_v15 = vmax.f32 %v2317_v7, %v1870_v13  ;;  %v2380_v18 = vmax.f32 %v2379_v8, %v2063_v14  ;;  %v1872_v19 = vpop.f32.mrb[126].mxu0  ;;  %v2065_v20 = vpop.f32.mrb[126].mxu1 }
 0x443   : > { %v2288_v21 = vmax.f32 %v2287_v11, %v1872_v19  ;;  %v2350_v22 = vmax.f32 %v2349_v12, %v2065_v20  ;;  %v1874_v23 = vpop.f32.mrb[127].mxu0  ;;  %v2067_v24 = vpop.f32.mrb[127].mxu1 }
 0x444   : > { %v2319_v29 = vmax.f32 %v2318_v15, %v1874_v23  ;;  %v2381_v30 = vmax.f32 %v2380_v18, %v2067_v24 }
 0x448   : > { %v1878_v31 = vpop.f32.mrb[128].mxu0  ;;  %v2071_v32 = vpop.f32.mrb[128].mxu1 }
 0x449   : > { %v2289_v33 = vmax.f32 %v2288_v21, %v1878_v31  ;;  %v2351_v17 = vmax.f32 %v2350_v22, %v2071_v32  ;;  %v1880_v34 = vpop.f32.mrb[129].mxu0  ;;  %v2073_v43 = vpop.f32.mrb[129].mxu1 }
 0x44a   : > { %v2320_v53 = vmax.f32 %v2319_v29, %v1880_v34  ;;  %v2382_v56 = vmax.f32 %v2381_v30, %v2073_v43  ;;  %v1882_v25 = vpop.f32.mrb[130].mxu0  ;;  %v2075_v26 = vpop.f32.mrb[130].mxu1 }
 0x44b   : > { %v2290_v59 = vmax.f32 %v2289_v33, %v1882_v25  ;;  %v2352_v60 = vmax.f32 %v2351_v17, %v2075_v26  ;;  %v1884_v27 = vpop.f32.mrb[131].mxu0  ;;  %v2077_v28 = vpop.f32.mrb[131].mxu1 }
 0x44c   : > { %v2321_v37 = vmax.f32 %v2320_v53, %v1884_v27  ;;  %v2383_v38 = vmax.f32 %v2382_v56, %v2077_v28 }
 0x450   : > { %v1888_v39 = vpop.f32.mrb[132].mxu0  ;;  %v2081_v40 = vpop.f32.mrb[132].mxu1 }
 0x451   : > { %v2291_v41 = vmax.f32 %v2290_v59, %v1888_v39  ;;  %v2353_v36 = vmax.f32 %v2352_v60, %v2081_v40  ;;  %v1890_v16 = vpop.f32.mrb[133].mxu0  ;;  %v2083_v42 = vpop.f32.mrb[133].mxu1 }
 0x452   : > { %v2322_v44 = vmax.f32 %v2321_v37, %v1890_v16  ;;  %v2384_v45 = vmax.f32 %v2383_v38, %v2083_v42  ;;  %v1892_v46 = vpop.f32.mrb[134].mxu0  ;;  %v2085_v47 = vpop.f32.mrb[134].mxu1 }
 0x453   : > { %v2292_v48 = vmax.f32 %v2291_v41, %v1892_v46  ;;  %v2354_v49 = vmax.f32 %v2353_v36, %v2085_v47  ;;  %v1894_v51 = vpop.f32.mrb[135].mxu0  ;;  %v2087_v52 = vpop.f32.mrb[135].mxu1 }
 0x454   : > { %v2323_v54 = vmax.f32 %v2322_v44, %v1894_v51  ;;  %v2385_v55 = vmax.f32 %v2384_v45, %v2087_v52 }
 0x458   : > { %v1898_v57 = vpop.f32.mrb[136].mxu0  ;;  %v2091_v58 = vpop.f32.mrb[136].mxu1 }
 0x459   : > { %v2293_v61 = vmax.f32 %v2292_v48, %v1898_v57  ;;  %v2355_v50 = vmax.f32 %v2354_v49, %v2091_v58  ;;  %v1900_v62 = vpop.f32.mrb[137].mxu0  ;;  %v2093_v63 = vpop.f32.mrb[137].mxu1 }
 0x45a   : > { %v2324_v0 = vmax.f32 %v2323_v54, %v1900_v62  ;;  %v2386_v35 = vmax.f32 %v2385_v55, %v2093_v63  ;;  %v1902_v1 = vpop.f32.mrb[138].mxu0  ;;  %v2095_v2 = vpop.f32.mrb[138].mxu1 }
 0x45b   : > { %v2294_v3 = vmax.f32 %v2293_v61, %v1902_v1  ;;  %v2356_v4 = vmax.f32 %v2355_v50, %v2095_v2  ;;  %v1904_v5 = vpop.f32.mrb[139].mxu0  ;;  %v2097_v6 = vpop.f32.mrb[139].mxu1 }
 0x45c   : > { %v2325_v7 = vmax.f32 %v2324_v0, %v1904_v5  ;;  %v2387_v8 = vmax.f32 %v2386_v35, %v2097_v6 }
 0x460   : > { %v1908_v9 = vpop.f32.mrb[140].mxu0  ;;  %v2101_v10 = vpop.f32.mrb[140].mxu1 }
 0x461   : > { %v2295_v11 = vmax.f32 %v2294_v3, %v1908_v9  ;;  %v2357_v12 = vmax.f32 %v2356_v4, %v2101_v10  ;;  %v1910_v13 = vpop.f32.mrb[141].mxu0  ;;  %v2103_v14 = vpop.f32.mrb[141].mxu1 }
 0x462   : > { %v2326_v15 = vmax.f32 %v2325_v7, %v1910_v13  ;;  %v2388_v18 = vmax.f32 %v2387_v8, %v2103_v14  ;;  %v1912_v19 = vpop.f32.mrb[142].mxu0  ;;  %v2105_v20 = vpop.f32.mrb[142].mxu1 }
 0x463   : > { %v2296_v21 = vmax.f32 %v2295_v11, %v1912_v19  ;;  %v2358_v22 = vmax.f32 %v2357_v12, %v2105_v20  ;;  %v1914_v23 = vpop.f32.mrb[143].mxu0  ;;  %v2107_v24 = vpop.f32.mrb[143].mxu1 }
 0x464   : > { %v2327_v29 = vmax.f32 %v2326_v15, %v1914_v23  ;;  %v2389_v30 = vmax.f32 %v2388_v18, %v2107_v24 }
 0x468   : > { %v1918_v31 = vpop.f32.mrb[144].mxu0  ;;  %v2111_v32 = vpop.f32.mrb[144].mxu1 }
 0x469   : > { %v2297_v33 = vmax.f32 %v2296_v21, %v1918_v31  ;;  %v2359_v17 = vmax.f32 %v2358_v22, %v2111_v32  ;;  %v1920_v34 = vpop.f32.mrb[145].mxu0  ;;  %v2113_v43 = vpop.f32.mrb[145].mxu1 }
 0x46a   : > { %v2328_v53 = vmax.f32 %v2327_v29, %v1920_v34  ;;  %v2390_v56 = vmax.f32 %v2389_v30, %v2113_v43  ;;  %v1922_v25 = vpop.f32.mrb[146].mxu0  ;;  %v2115_v26 = vpop.f32.mrb[146].mxu1 }
 0x46b   : > { %v2298_v59 = vmax.f32 %v2297_v33, %v1922_v25  ;;  %v2360_v60 = vmax.f32 %v2359_v17, %v2115_v26  ;;  %v1924_v27 = vpop.f32.mrb[147].mxu0  ;;  %v2117_v28 = vpop.f32.mrb[147].mxu1 }
 0x46c   : > { %v2329_v37 = vmax.f32 %v2328_v53, %v1924_v27  ;;  %v2391_v38 = vmax.f32 %v2390_v56, %v2117_v28 }
 0x470   : > { %v1928_v39 = vpop.f32.mrb[148].mxu0  ;;  %v2121_v40 = vpop.f32.mrb[148].mxu1 }
 0x471   : > { %v2299_v41 = vmax.f32 %v2298_v59, %v1928_v39  ;;  %v2361_v36 = vmax.f32 %v2360_v60, %v2121_v40  ;;  %v1930_v16 = vpop.f32.mrb[149].mxu0  ;;  %v2123_v42 = vpop.f32.mrb[149].mxu1 }
 0x472   : > { %v2330_v44 = vmax.f32 %v2329_v37, %v1930_v16  ;;  %v2392_v45 = vmax.f32 %v2391_v38, %v2123_v42  ;;  %v1932_v46 = vpop.f32.mrb[150].mxu0  ;;  %v2125_v47 = vpop.f32.mrb[150].mxu1 }
 0x473   : > { %v2300_v48 = vmax.f32 %v2299_v41, %v1932_v46  ;;  %v2362_v49 = vmax.f32 %v2361_v36, %v2125_v47  ;;  %v1934_v51 = vpop.f32.mrb[151].mxu0  ;;  %v2127_v52 = vpop.f32.mrb[151].mxu1 }
 0x474   : > { %v2331_v54 = vmax.f32 %v2330_v44, %v1934_v51  ;;  %v2393_v55 = vmax.f32 %v2392_v45, %v2127_v52 }
 0x478   : > { %v1938_v57 = vpop.f32.mrb[152].mxu0  ;;  %v2131_v58 = vpop.f32.mrb[152].mxu1 }
 0x479   : > { %v2301_v61 = vmax.f32 %v2300_v48, %v1938_v57  ;;  %v2363_v50 = vmax.f32 %v2362_v49, %v2131_v58  ;;  %v1940_v62 = vpop.f32.mrb[153].mxu0  ;;  %v2133_v63 = vpop.f32.mrb[153].mxu1 }
 0x47a   : > { %v2332_v0 = vmax.f32 %v2331_v54, %v1940_v62  ;;  %v2394_v35 = vmax.f32 %v2393_v55, %v2133_v63  ;;  %v1942_v1 = vpop.f32.mrb[154].mxu0  ;;  %v2135_v2 = vpop.f32.mrb[154].mxu1 }
 0x47b   : > { %v2302_v3 = vmax.f32 %v2301_v61, %v1942_v1  ;;  %v2364_v4 = vmax.f32 %v2363_v50, %v2135_v2  ;;  %v1944_v5 = vpop.f32.mrb[155].mxu0  ;;  %v2137_v6 = vpop.f32.mrb[155].mxu1 }
 0x47c   : > { %v2333_v7 = vmax.f32 %v2332_v0, %v1944_v5  ;;  %v2395_v8 = vmax.f32 %v2394_v35, %v2137_v6 }
 0x480   : > { %v1948_v9 = vpop.f32.mrb[156].mxu0  ;;  %v2141_v10 = vpop.f32.mrb[156].mxu1 }
 0x481   : > { %v2303_v11 = vmax.f32 %v2302_v3, %v1948_v9  ;;  %v2365_v12 = vmax.f32 %v2364_v4, %v2141_v10  ;;  %v1950_v13 = vpop.f32.mrb[157].mxu0  ;;  %v2143_v14 = vpop.f32.mrb[157].mxu1 }
 0x482   : > { %v2334_v15 = vmax.f32 %v2333_v7, %v1950_v13  ;;  %v2396_v18 = vmax.f32 %v2395_v8, %v2143_v14  ;;  %v1952_v19 = vpop.f32.mrb[158].mxu0  ;;  %v2145_v20 = vpop.f32.mrb[158].mxu1 }
 0x483   : > { %v2304_v21 = vmax.f32 %v2303_v11, %v1952_v19  ;;  %v2366_v22 = vmax.f32 %v2365_v12, %v2145_v20  ;;  %v1954_v23 = vpop.f32.mrb[159].mxu0  ;;  %v2147_v24 = vpop.f32.mrb[159].mxu1 }
 0x484   : > { %v2335_v29 = vmax.f32 %v2334_v15, %v1954_v23  ;;  %v2397_v30 = vmax.f32 %v2396_v18, %v2147_v24 }
 0x485   : > { %2406 = vst [vmem:[%s3703_s14 + $0x20] sm:$0xff] %v2304_v21  ;;  %2408 = vst [vmem:[%s3703_s14 + $0x30] sm:$0xff] %v2366_v22 }
 0x486   : > { %2407 = vst [vmem:[%s3703_s14 + $0x28] sm:$0xff] %v2335_v29  ;;  %2409 = vst [vmem:[%s3703_s14 + $0x38] sm:$0xff] %v2397_v30 }
 0x487   : > { %3056 = shalt.err (!%p3053_p0)
}
 0x488   : > { %s3057_s6 = scalar_lea.hbm %s3714_s17, 1024  ;;  %s3061_s9 = scalar_lea.hbm %s3797_s15, 2048 }
 0x489   : > { %p3058_p4 = scmp.ne.s32.totalorder %s3714_s17, %s3057_s6  ;;  %p3062_p12 = scmp.lt.u32.totalorder %s3714_s17, %s3797_s15 }
 0x48a   : > { %p3063_p1 = scmp.lt.u32.totalorder %s3061_s9, %s3057_s6  ;;  %p3065_p13 = scmp.lt.u32.totalorder %s3057_s6, %s3714_s17 }
 0x48b   : > { %p3059_p2 = pnand %p3058_p4, %p3333_p10 }
 0x48c   : > { %p3064_p11 = por %p3063_p1, %p3062_p12 }
 0x48d   : > { %p3060_p8 = pneg %p3059_p2 }
 0x48e   : > { %p3066_p6 = por %p3065_p13, %p3064_p11 }
 0x490   : > { %p3067_p3 = pnand %p3066_p6, %p3060_p8 }
 0x492   : > { %3070 = shalt.err (!%p3067_p3)
}
 0x493   : > { %2835 = dma.vmem_to_hbm [thread:$0]  (%p3333_p10), %s3716_s12, 1024, %s3714_s17, %s2439_s24  }
 0x494 PF: > { %s3798_s14 = sld [smem:[#allocation15_spill]]  ;;  %s3799_s28 = sld [smem:[#allocation16_spill]] }
 0x495   : > { %p3801_p7 = scmp.ge.s32.totalorder %s3133_s26, 2 }
 0x49a   : > { %s2467_s10 = sand.u32 1, %s3798_s14   ;;  %p3800_p5 = scmp.ne.s32.totalorder %s3799_s28, 0 }
 0x49b   : > { %s2468_s13 = scalar_lea.sflag [#allocation4], %s2467_s10 }
 0x49c   : > { %p2852_p9 = pnand %p3801_p7, %p3800_p5 }
 0x49e   : > { %3108 = dma.done.wait (!%p2852_p9), %s2468_s13, 1024  }
 0x49f   : > { %3110 = vsyncadd (!%p2852_p9), %s2468_s13, 4294966272  ;;  %s24_s26 = sadd.s32 1, %s3133_s26   ;;  %s3802_s8 = smov %s3809_s21 }
 0x4a0   : > { %p21_p0 = scmp.ge.s32.totalorder %s24_s26, 4   ;;  %s3803_s21 = smov %s3117_s22 }
 0x4a1   : > { %s3804_s22 = smov %s3121_s23  ;;  %s3805_s23 = smov %s3345_s27 }
 0x4a2   : > { %s3806_s24 = smov %s3129_s25  ;;  %s3807_s25 = smov %s3802_s8 }
 0x4a3   :  { %23 = sbr.rel (!%p21_p0) target bundleno = 10 (0xa), region = 109 }
 0x4aa   :  { %2473 = vsyncpa [#allocation3], 1 }
 0x4ab   :  { %2475 = vsyncpa [#allocation3 + $0x1], 1 }
 0x4ac   :  { %2476 = vsyncpa [#allocation6], 1 }
 0x4ad   :  { %2477 = vsyncpa [#allocation9], 1 }
 0x4ae   :  { %2478 = vsyncpa [#allocation4], 1 }
 0x4af   :  { %2480 = vsyncpa [#allocation4 + $0x1], 1 }

</bundles_post_ra>
